<compile_context>
chip_gen: v6e
topology: v6e:2x2x1
jax: 0.10.0
libtpu: 0.0.40
codegen_flags: <defaults>
</compile_context>

<pallas_src>
from functools import partial

import jax
import jax.numpy as jnp
from jax.experimental import pallas as pl
from jax.experimental.pallas import tpu as pltpu

KERNEL_SIZE = 3        # Chebyshev polynomial degree (K)
BN_EPS = 1e-5
UNPOOL_FACTOR = 4      # HEALPix nearest unpooling factor


# ----------------------------------------------------------------------------
# In-kernel helpers
# ----------------------------------------------------------------------------
def _cheb_basis(L, x, K):
    """Concatenated Chebyshev basis [T_0(L)x | ... | T_{K-1}(L)x] (bf16).

    L: [V, V] bf16, x: [V, C] bf16 -> [V, K*C] bf16.
    """
    ts = [x]
    if K > 1:
        t_km2 = x
        t_km1 = jnp.dot(L, x, preferred_element_type=jnp.float32).astype(jnp.bfloat16)
        ts.append(t_km1)
        for _ in range(2, K):  # T_k = 2 L T_{k-1} - T_{k-2}
            t_k = (2.0 * jnp.dot(L, t_km1, preferred_element_type=jnp.float32)
                   - t_km2.astype(jnp.float32)).astype(jnp.bfloat16)
            ts.append(t_k)
            t_km2, t_km1 = t_km1, t_k
    return jnp.concatenate(ts, axis=-1)


def _cheb_bn_relu(L, x, w, s, t, K):
    """ChebConv (single stacked weight matmul) + folded BN affine + ReLU.

    L: [V,V] bf16, x: [V,Cin] bf16, w: [K*Cin, Cout] bf16,
    s/t: [1, Cout] f32 (ChebConv bias folded into t).  Returns [V, Cout] f32.
    """
    xk = _cheb_basis(L, x, K)                                       # [V, K*Cin]
    y = jnp.dot(xk, w, preferred_element_type=jnp.float32)          # [V, Cout]
    return jnp.maximum(y * s + t, 0.0)


def _block_body(K, lap_ref, rep_ref, x_ref, c_ref,
                w1_ref, s1_ref, t1_ref, w2_ref, s2_ref, t2_ref):
    """Unpool(x4) + concat + (ChebConv+BN+ReLU) x2 for one batch element."""
    L = lap_ref[...].astype(jnp.bfloat16)                           # [V, V]
    # Nearest unpooling as an exact 0/1 MXU matmul: [V,Vq] @ [Vq,Cx] -> [V,Cx].
    xu = jnp.dot(rep_ref[...], x_ref[0].astype(jnp.bfloat16),
                 preferred_element_type=jnp.float32).astype(jnp.bfloat16)
    xin = jnp.concatenate([xu, c_ref[0].astype(jnp.bfloat16)], axis=-1)
    y1 = _cheb_bn_relu(L, xin, w1_ref[...], s1_ref[...], t1_ref[...], K)
    y2 = _cheb_bn_relu(L, y1.astype(jnp.bfloat16),
                       w2_ref[...], s2_ref[...], t2_ref[...], K)
    return y2                                                       # [V, Cout] f32


# ----------------------------------------------------------------------------
# Pallas kernels
# ----------------------------------------------------------------------------
def _dec_block_kernel(K, lap_ref, rep_ref, x_ref, c_ref, w1_ref, s1_ref, t1_ref,
                      w2_ref, s2_ref, t2_ref, o_ref):
    """Fused decoder block.  o: [1, V, Cout] bf16."""
    y2 = _block_body(K, lap_ref, rep_ref, x_ref, c_ref,
                     w1_ref, s1_ref, t1_ref, w2_ref, s2_ref, t2_ref)
    o_ref[0] = y2.astype(o_ref.dtype)


def _dec_block_fin_kernel(K, lap_ref, rep_ref, x_ref, c_ref, w1_ref, s1_ref, t1_ref,
                          w2_ref, s2_ref, t2_ref, fw_ref, fb_ref, o_ref):
    """Fused decoder block + 1x1 Conv1d, lane-dense output [1, 1, V]."""
    y2 = _block_body(K, lap_ref, rep_ref, x_ref, c_ref,
                     w1_ref, s1_ref, t1_ref, w2_ref, s2_ref, t2_ref)
    # (y2 @ fin_w)^T computed directly as fin_w_row @ y2^T -> [1, V] (lane-dense).
    out = jnp.dot(fw_ref[...], y2.astype(jnp.bfloat16).T,
                  preferred_element_type=jnp.float32)
    o_ref[0] = (out + fb_ref[...]).astype(o_ref.dtype)


# ----------------------------------------------------------------------------
# Wrappers
# ----------------------------------------------------------------------------
def fused_dec_block(x, concat_data, lap, p1, p2, fin=None):
    """x: [B, V/4, Cx], concat_data: [B, V, Cc], lap: [V, V] f32.

    Returns [B, V, Cout] bf16, or [B, 1, V] f32 if `fin` (final 1x1 conv) given.
    """
    B, Vq, Cx = x.shape
    _, V, Cc = concat_data.shape
    assert V == UNPOOL_FACTOR * Vq
    Cin = Cx + Cc
    K, _, Cmid = p1["w"].shape
    Cout = p2["w"].shape[2]

    # 0/1 nearest-unpool operator: row v selects source vertex v // 4.
    rep = jnp.repeat(jnp.eye(Vq, dtype=jnp.bfloat16), UNPOOL_FACTOR, axis=0)

    # Stack the K Chebyshev weights into one [K*Cin, Cout] matrix (one matmul).
    w1 = p1["w"].reshape(K * Cin, Cmid).astype(jnp.bfloat16)
    w2 = p2["w"].reshape(K * Cmid, Cout).astype(jnp.bfloat16)
    # Fold ChebConv bias into the eval-mode BN affine: y = acc*s + (b*s + t).
    s1 = p1["scale"].reshape(1, Cmid)
    t1 = (p1["b"] * p1["scale"] + p1["shift"]).reshape(1, Cmid)
    s2 = p2["scale"].reshape(1, Cout)
    t2 = (p2["b"] * p2["scale"] + p2["shift"]).reshape(1, Cout)

    in_specs = [
        pl.BlockSpec((V, V), lambda b: (0, 0)),            # lap f32 (grid-invariant)
        pl.BlockSpec((V, Vq), lambda b: (0, 0)),           # unpool operator R
        pl.BlockSpec((1, Vq, Cx), lambda b: (b, 0, 0)),    # x (per batch)
        pl.BlockSpec((1, V, Cc), lambda b: (b, 0, 0)),     # skip tensor (per batch)
        pl.BlockSpec((K * Cin, Cmid), lambda b: (0, 0)),   # w1
        pl.BlockSpec((1, Cmid), lambda b: (0, 0)),         # s1
        pl.BlockSpec((1, Cmid), lambda b: (0, 0)),         # t1
        pl.BlockSpec((K * Cmid, Cout), lambda b: (0, 0)),  # w2
        pl.BlockSpec((1, Cout), lambda b: (0, 0)),         # s2
        pl.BlockSpec((1, Cout), lambda b: (0, 0)),         # t2
    ]
    args = (lap, rep, x, concat_data, w1, s1, t1, w2, s2, t2)

    if fin is None:
        kernel = partial(_dec_block_kernel, K)
        out_shape = jax.ShapeDtypeStruct((B, V, Cout), jnp.bfloat16)
        out_spec = pl.BlockSpec((1, V, Cout), lambda b: (b, 0, 0))
    else:
        fin_w, fin_b = fin
        kernel = partial(_dec_block_fin_kernel, K)
        out_shape = jax.ShapeDtypeStruct((B, 1, V), jnp.float32)
        out_spec = pl.BlockSpec((1, 1, V), lambda b: (b, 0, 0))
        in_specs = in_specs + [
            pl.BlockSpec((1, Cout), lambda b: (0, 0)),     # fin_w row
            pl.BlockSpec((1, 1), lambda b: (0, 0)),        # fin_b
        ]
        args = args + (fin_w.reshape(1, Cout).astype(jnp.bfloat16),
                       fin_b.reshape(1, 1).astype(jnp.float32))

    return pl.pallas_call(
        kernel,
        out_shape=out_shape,
        grid=(B,),
        in_specs=in_specs,
        out_specs=out_spec,
        compiler_params=pltpu.CompilerParams(
            dimension_semantics=("parallel",),
            vmem_limit_bytes=32 * 1024 * 1024),
    )(*args)


def decoder_forward(params, laps, x_enc0, x_enc1, x_enc2, x_enc3):
    x = fused_dec_block(x_enc0, x_enc1, laps[1], params["l1_c1"], params["l1_c2"])
    x = fused_dec_block(x, x_enc2, laps[2], params["l2_c1"], params["l2_c2"])
    x = fused_dec_block(x, x_enc3, laps[3], params["l3_c1"], params["l3_c2"],
                        fin=(params["fin_w"], params["fin_b"]))
    return x   # [B, 1, V]  (PyTorch Conv1d layout, already lane-dense)


# ----------------------------------------------------------------------------
# Pure-JAX f32 reference (for a sanity check)
# ----------------------------------------------------------------------------
def _cheb_ref(x, lap, w, b, scale, shift):
    K = w.shape[0]
    xs = [x]
    if K > 1:
        xs.append(jnp.einsum("uv,bvc->buc", lap, xs[0]))
        for _ in range(2, K):
            xs.append(2.0 * jnp.einsum("uv,bvc->buc", lap, xs[-1]) - xs[-2])
    y = sum(jnp.einsum("bvc,co->bvo", xs[k], w[k]) for k in range(K)) + b
    return jnp.maximum(y * scale + shift, 0.0)


def _block_ref(x, concat_data, lap, p1, p2):
    x = jnp.concatenate([jnp.repeat(x, UNPOOL_FACTOR, axis=1), concat_data], axis=2)
    x = _cheb_ref(x, lap, p1["w"], p1["b"], p1["scale"], p1["shift"])
    x = _cheb_ref(x, lap, p2["w"], p2["b"], p2["scale"], p2["shift"])
    return x


def decoder_ref(params, laps, x_enc0, x_enc1, x_enc2, x_enc3):
    x = _block_ref(x_enc0, x_enc1, laps[1], params["l1_c1"], params["l1_c2"])
    x = _block_ref(x, x_enc2, laps[2], params["l2_c1"], params["l2_c2"])
    x = _block_ref(x, x_enc3, laps[3], params["l3_c1"], params["l3_c2"])
    x = jnp.einsum("bvc,co->bvo", x, params["fin_w"]) + params["fin_b"]
    return jnp.transpose(x, (0, 2, 1))


# ----------------------------------------------------------------------------
# Deterministic parameter / data construction
# ----------------------------------------------------------------------------
def make_cheb_bn_params(key, cin, cout, K):
    kw, kb, kg, kbe, km, kv = jax.random.split(key, 6)
    std = 1.0 / jnp.sqrt(jnp.float32(K * cin))
    w = jax.random.normal(kw, (K, cin, cout), jnp.float32) * std
    b = jax.random.normal(kb, (cout,), jnp.float32) * 0.1
    gamma = 1.0 + 0.1 * jax.random.normal(kg, (cout,), jnp.float32)
    beta = 0.1 * jax.random.normal(kbe, (cout,), jnp.float32)
    run_mean = 0.1 * jax.random.normal(km, (cout,), jnp.float32)
    run_var = 1.0 + 0.1 * jax.random.uniform(kv, (cout,), jnp.float32)
    scale = gamma / jnp.sqrt(run_var + BN_EPS)   # eval-mode BN folded to affine
    shift = beta - run_mean * scale
    return dict(w=w, b=b, scale=scale, shift=shift)


def make_lap(key, V):
    a = jax.random.normal(key, (V, V), jnp.float32)
    return (a + a.T) / (2.0 * jnp.sqrt(jnp.float32(V)))   # dense symmetric "Laplacian"


# ----------------------------------------------------------------------------
if __name__ == "__main__":
    B, V0, K = 2, 8, KERNEL_SIZE
    key = jax.random.PRNGKey(0)
    keys = jax.random.split(key, 16)

    # Encoder feature maps (channel counts fixed by the Decoder definition).
    x_enc0 = jax.random.normal(keys[0], (B, V0, 256), jnp.float32)
    x_enc1 = jax.random.normal(keys[1], (B, 4 * V0, 256), jnp.float32)
    x_enc2 = jax.random.normal(keys[2], (B, 16 * V0, 128), jnp.float32)
    x_enc3 = jax.random.normal(keys[3], (B, 64 * V0, 64), jnp.float32)

    # laps[1..3] at the three decoder resolutions.
    laps = [None,
            make_lap(keys[4], 4 * V0),
            make_lap(keys[5], 16 * V0),
            make_lap(keys[6], 64 * V0)]

    params = {
        "l1_c1": make_cheb_bn_params(keys[7], 256 + 256, 256, K),
        "l1_c2": make_cheb_bn_params(keys[8], 256, 128, K),
        "l2_c1": make_cheb_bn_params(keys[9], 128 + 128, 128, K),
        "l2_c2": make_cheb_bn_params(keys[10], 128, 64, K),
        "l3_c1": make_cheb_bn_params(keys[11], 64 + 64, 32, K),
        "l3_c2": make_cheb_bn_params(keys[12], 32, 16, K),
        "fin_w": jax.random.normal(keys[13], (16, 1), jnp.float32) / 4.0,
        "fin_b": jax.random.normal(keys[14], (1,), jnp.float32) * 0.1,
    }

    out = decoder_forward(params, laps, x_enc0, x_enc1, x_enc2, x_enc3)
    out = jax.block_until_ready(out)

    assert out.shape == (B, 1, 64 * V0), out.shape
    assert bool(jnp.all(jnp.isfinite(out)))

    ref = jax.block_until_ready(
        decoder_ref(params, laps, x_enc0, x_enc1, x_enc2, x_enc3))
    max_err = float(jnp.max(jnp.abs(out - ref)))
    assert max_err < 0.1, f"kernel vs reference mismatch: {max_err}"

    print("KERNEL_OK")
</pallas_src>

<mosaic_0001>
module attributes {stable_mosaic.version = 11 : i64} {
  func.func @_dec_block_kernel(%arg0: i32, %arg1: memref<32x32xf32, #tpu.memory_space<vmem>>, %arg2: memref<32x8xbf16, #tpu.memory_space<vmem>>, %arg3: memref<1x8x256xf32, #tpu.memory_space<vmem>>, %arg4: memref<1x32x256xf32, #tpu.memory_space<vmem>>, %arg5: memref<1536x256xbf16, #tpu.memory_space<vmem>>, %arg6: memref<1x256xf32, #tpu.memory_space<vmem>>, %arg7: memref<1x256xf32, #tpu.memory_space<vmem>>, %arg8: memref<768x128xbf16, #tpu.memory_space<vmem>>, %arg9: memref<1x128xf32, #tpu.memory_space<vmem>>, %arg10: memref<1x128xf32, #tpu.memory_space<vmem>>, %arg11: memref<1x32x128xbf16, #tpu.memory_space<vmem>>) attributes {dimension_semantics = [#tpu.dimension_semantics<parallel>], iteration_bounds = array<i64: 2>, scalar_prefetch = 0 : i64, scratch_operands = 0 : i64, tpu.core_type = #tpu.core_type<tc>, window_params = [{pipeline_mode = #tpu.pipeline_mode<synchronous>, transform_indices = @transform_0, window_bounds = array<i64: 32, 32>}, {pipeline_mode = #tpu.pipeline_mode<synchronous>, transform_indices = @transform_1, window_bounds = array<i64: 32, 8>}, {transform_indices = @transform_2, window_bounds = array<i64: 1, 8, 256>}, {transform_indices = @transform_3, window_bounds = array<i64: 1, 32, 256>}, {pipeline_mode = #tpu.pipeline_mode<synchronous>, transform_indices = @transform_4, window_bounds = array<i64: 1536, 256>}, {pipeline_mode = #tpu.pipeline_mode<synchronous>, transform_indices = @transform_5, window_bounds = array<i64: 1, 256>}, {pipeline_mode = #tpu.pipeline_mode<synchronous>, transform_indices = @transform_6, window_bounds = array<i64: 1, 256>}, {pipeline_mode = #tpu.pipeline_mode<synchronous>, transform_indices = @transform_7, window_bounds = array<i64: 768, 128>}, {pipeline_mode = #tpu.pipeline_mode<synchronous>, transform_indices = @transform_8, window_bounds = array<i64: 1, 128>}, {pipeline_mode = #tpu.pipeline_mode<synchronous>, transform_indices = @transform_9, window_bounds = array<i64: 1, 128>}, {transform_indices = @transform_10, window_bounds = array<i64: 1, 32, 128>}]} {
    %c0 = arith.constant 0 : index
    %c0_0 = arith.constant 0 : index
    %0 = vector.load %arg1[%c0, %c0_0] : memref<32x32xf32, #tpu.memory_space<vmem>>, vector<32x32xf32>
    %1 = arith.truncf %0 : vector<32x32xf32> to vector<32x32xbf16>
    %c0_1 = arith.constant 0 : index
    %c0_2 = arith.constant 0 : index
    %2 = vector.load %arg2[%c0_1, %c0_2] : memref<32x8xbf16, #tpu.memory_space<vmem>>, vector<32x8xbf16>
    %c0_3 = arith.constant 0 : index
    %c0_4 = arith.constant 0 : index
    %c0_5 = arith.constant 0 : index
    %3 = vector.load %arg3[%c0_3, %c0_4, %c0_5] : memref<1x8x256xf32, #tpu.memory_space<vmem>>, vector<1x8x256xf32>
    %4 = vector.shape_cast %3 : vector<1x8x256xf32> to vector<8x256xf32>
    %5 = arith.truncf %4 : vector<8x256xf32> to vector<8x256xbf16>
    %cst = arith.constant dense<0.000000e+00> : vector<32x256xf32>
    %6 = tpu.matmul %2, %5, %cst {dimension_numbers = #tpu.dot_dimension_numbers<[1], [0], [0], [1], [0, 0, 1, 1], [], []>} : vector<32x8xbf16>, vector<8x256xbf16>, vector<32x256xf32> -> vector<32x256xf32>
    %7 = arith.truncf %6 : vector<32x256xf32> to vector<32x256xbf16>
    %c0_6 = arith.constant 0 : index
    %c0_7 = arith.constant 0 : index
    %c0_8 = arith.constant 0 : index
    %8 = vector.load %arg4[%c0_6, %c0_7, %c0_8] : memref<1x32x256xf32, #tpu.memory_space<vmem>>, vector<1x32x256xf32>
    %9 = vector.shape_cast %8 : vector<1x32x256xf32> to vector<32x256xf32>
    %10 = arith.truncf %9 : vector<32x256xf32> to vector<32x256xbf16>
    %11 = tpu.concatenate %7, %10 in 1 : vector<32x256xbf16>, vector<32x256xbf16> -> vector<32x512xbf16>
    %c0_9 = arith.constant 0 : index
    %c0_10 = arith.constant 0 : index
    %12 = vector.load %arg5[%c0_9, %c0_10] : memref<1536x256xbf16, #tpu.memory_space<vmem>>, vector<1536x256xbf16>
    %c0_11 = arith.constant 0 : index
    %c0_12 = arith.constant 0 : index
    %13 = vector.load %arg6[%c0_11, %c0_12] : memref<1x256xf32, #tpu.memory_space<vmem>>, vector<1x256xf32>
    %c0_13 = arith.constant 0 : index
    %c0_14 = arith.constant 0 : index
    %14 = vector.load %arg7[%c0_13, %c0_14] : memref<1x256xf32, #tpu.memory_space<vmem>>, vector<1x256xf32>
    %cst_15 = arith.constant dense<0.000000e+00> : vector<32x512xf32>
    %15 = tpu.matmul %1, %11, %cst_15 {dimension_numbers = #tpu.dot_dimension_numbers<[1], [0], [0], [1], [0, 0, 1, 1], [], []>} : vector<32x32xbf16>, vector<32x512xbf16>, vector<32x512xf32> -> vector<32x512xf32>
    %16 = arith.truncf %15 : vector<32x512xf32> to vector<32x512xbf16>
    %cst_16 = arith.constant dense<0.000000e+00> : vector<32x512xf32>
    %17 = tpu.matmul %1, %16, %cst_16 {dimension_numbers = #tpu.dot_dimension_numbers<[1], [0], [0], [1], [0, 0, 1, 1], [], []>} : vector<32x32xbf16>, vector<32x512xbf16>, vector<32x512xf32> -> vector<32x512xf32>
    %cst_17 = arith.constant 2.000000e+00 : f32
    %18 = vector.broadcast %cst_17 : f32 to vector<32x512xf32>
    %19 = arith.mulf %18, %17 : vector<32x512xf32>
    %20 = arith.extf %11 : vector<32x512xbf16> to vector<32x512xf32>
    %21 = arith.subf %19, %20 : vector<32x512xf32>
    %22 = arith.truncf %21 : vector<32x512xf32> to vector<32x512xbf16>
    %23 = tpu.concatenate %11, %16, %22 in 1 : vector<32x512xbf16>, vector<32x512xbf16>, vector<32x512xbf16> -> vector<32x1536xbf16>
    %cst_18 = arith.constant dense<0.000000e+00> : vector<32x256xf32>
    %24 = tpu.matmul %23, %12, %cst_18 {dimension_numbers = #tpu.dot_dimension_numbers<[1], [0], [0], [1], [0, 0, 1, 1], [], []>} : vector<32x1536xbf16>, vector<1536x256xbf16>, vector<32x256xf32> -> vector<32x256xf32>
    %25 = vector.broadcast %13 : vector<1x256xf32> to vector<32x256xf32>
    %26 = arith.mulf %24, %25 : vector<32x256xf32>
    %27 = vector.broadcast %14 : vector<1x256xf32> to vector<32x256xf32>
    %28 = arith.addf %26, %27 : vector<32x256xf32>
    %cst_19 = arith.constant 0.000000e+00 : f32
    %29 = vector.broadcast %cst_19 : f32 to vector<32x256xf32>
    %30 = arith.maximumf %28, %29 : vector<32x256xf32>
    %31 = arith.truncf %30 : vector<32x256xf32> to vector<32x256xbf16>
    %c0_20 = arith.constant 0 : index
    %c0_21 = arith.constant 0 : index
    %32 = vector.load %arg8[%c0_20, %c0_21] : memref<768x128xbf16, #tpu.memory_space<vmem>>, vector<768x128xbf16>
    %c0_22 = arith.constant 0 : index
    %c0_23 = arith.constant 0 : index
    %33 = vector.load %arg9[%c0_22, %c0_23] : memref<1x128xf32, #tpu.memory_space<vmem>>, vector<1x128xf32>
    %c0_24 = arith.constant 0 : index
    %c0_25 = arith.constant 0 : index
    %34 = vector.load %arg10[%c0_24, %c0_25] : memref<1x128xf32, #tpu.memory_space<vmem>>, vector<1x128xf32>
    %cst_26 = arith.constant dense<0.000000e+00> : vector<32x256xf32>
    %35 = tpu.matmul %1, %31, %cst_26 {dimension_numbers = #tpu.dot_dimension_numbers<[1], [0], [0], [1], [0, 0, 1, 1], [], []>} : vector<32x32xbf16>, vector<32x256xbf16>, vector<32x256xf32> -> vector<32x256xf32>
    %36 = arith.truncf %35 : vector<32x256xf32> to vector<32x256xbf16>
    %cst_27 = arith.constant dense<0.000000e+00> : vector<32x256xf32>
    %37 = tpu.matmul %1, %36, %cst_27 {dimension_numbers = #tpu.dot_dimension_numbers<[1], [0], [0], [1], [0, 0, 1, 1], [], []>} : vector<32x32xbf16>, vector<32x256xbf16>, vector<32x256xf32> -> vector<32x256xf32>
    %cst_28 = arith.constant 2.000000e+00 : f32
    %38 = vector.broadcast %cst_28 : f32 to vector<32x256xf32>
    %39 = arith.mulf %38, %37 : vector<32x256xf32>
    %40 = arith.extf %31 : vector<32x256xbf16> to vector<32x256xf32>
    %41 = arith.subf %39, %40 : vector<32x256xf32>
    %42 = arith.truncf %41 : vector<32x256xf32> to vector<32x256xbf16>
    %43 = tpu.concatenate %31, %36, %42 in 1 : vector<32x256xbf16>, vector<32x256xbf16>, vector<32x256xbf16> -> vector<32x768xbf16>
    %cst_29 = arith.constant dense<0.000000e+00> : vector<32x128xf32>
    %44 = tpu.matmul %43, %32, %cst_29 {dimension_numbers = #tpu.dot_dimension_numbers<[1], [0], [0], [1], [0, 0, 1, 1], [], []>} : vector<32x768xbf16>, vector<768x128xbf16>, vector<32x128xf32> -> vector<32x128xf32>
    %45 = vector.broadcast %33 : vector<1x128xf32> to vector<32x128xf32>
    %46 = arith.mulf %44, %45 : vector<32x128xf32>
    %47 = vector.broadcast %34 : vector<1x128xf32> to vector<32x128xf32>
    %48 = arith.addf %46, %47 : vector<32x128xf32>
    %cst_30 = arith.constant 0.000000e+00 : f32
    %49 = vector.broadcast %cst_30 : f32 to vector<32x128xf32>
    %50 = arith.maximumf %48, %49 : vector<32x128xf32>
    %51 = arith.truncf %50 : vector<32x128xf32> to vector<32x128xbf16>
    %c0_31 = arith.constant 0 : index
    %c0_32 = arith.constant 0 : index
    %c0_33 = arith.constant 0 : index
    %52 = vector.load %arg11[%c0_31, %c0_32, %c0_33] : memref<1x32x128xbf16, #tpu.memory_space<vmem>>, vector<1x32x128xbf16>
    %53 = vector.shape_cast %52 : vector<1x32x128xbf16> to vector<32x128xbf16>
    %54 = vector.shape_cast %51 : vector<32x128xbf16> to vector<1x32x128xbf16>
    tpu.vector_store %arg11[%c0_31, %c0_32, %c0_33], %54 {strides = array<i32>} : memref<1x32x128xbf16, #tpu.memory_space<vmem>>, vector<1x32x128xbf16>,
    return
  }
  func.func @transform_0(%arg0: i32) -> (i32, i32) {
    %c0_i32 = arith.constant 0 : i32
    %c0_i32_0 = arith.constant 0 : i32
    %c0_i32_1 = arith.constant 0 : i32
    return %c0_i32, %c0_i32_0 : i32, i32
  }
  func.func @transform_1(%arg0: i32) -> (i32, i32) {
    %c0_i32 = arith.constant 0 : i32
    %c0_i32_0 = arith.constant 0 : i32
    %c0_i32_1 = arith.constant 0 : i32
    return %c0_i32, %c0_i32_0 : i32, i32
  }
  func.func @transform_2(%arg0: i32) -> (i32, i32, i32) {
    %c0_i32 = arith.constant 0 : i32
    %c0_i32_0 = arith.constant 0 : i32
    %c0_i32_1 = arith.constant 0 : i32
    return %arg0, %c0_i32, %c0_i32_0 : i32, i32, i32
  }
  func.func @transform_3(%arg0: i32) -> (i32, i32, i32) {
    %c0_i32 = arith.constant 0 : i32
    %c0_i32_0 = arith.constant 0 : i32
    %c0_i32_1 = arith.constant 0 : i32
    return %arg0, %c0_i32, %c0_i32_0 : i32, i32, i32
  }
  func.func @transform_4(%arg0: i32) -> (i32, i32) {
    %c0_i32 = arith.constant 0 : i32
    %c0_i32_0 = arith.constant 0 : i32
    %c0_i32_1 = arith.constant 0 : i32
    return %c0_i32, %c0_i32_0 : i32, i32
  }
  func.func @transform_5(%arg0: i32) -> (i32, i32) {
    %c0_i32 = arith.constant 0 : i32
    %c0_i32_0 = arith.constant 0 : i32
    %c0_i32_1 = arith.constant 0 : i32
    return %c0_i32, %c0_i32_0 : i32, i32
  }
  func.func @transform_6(%arg0: i32) -> (i32, i32) {
    %c0_i32 = arith.constant 0 : i32
    %c0_i32_0 = arith.constant 0 : i32
    %c0_i32_1 = arith.constant 0 : i32
    return %c0_i32, %c0_i32_0 : i32, i32
  }
  func.func @transform_7(%arg0: i32) -> (i32, i32) {
    %c0_i32 = arith.constant 0 : i32
    %c0_i32_0 = arith.constant 0 : i32
    %c0_i32_1 = arith.constant 0 : i32
    return %c0_i32, %c0_i32_0 : i32, i32
  }
  func.func @transform_8(%arg0: i32) -> (i32, i32) {
    %c0_i32 = arith.constant 0 : i32
    %c0_i32_0 = arith.constant 0 : i32
    %c0_i32_1 = arith.constant 0 : i32
    return %c0_i32, %c0_i32_0 : i32, i32
  }
  func.func @transform_9(%arg0: i32) -> (i32, i32) {
    %c0_i32 = arith.constant 0 : i32
    %c0_i32_0 = arith.constant 0 : i32
    %c0_i32_1 = arith.constant 0 : i32
    return %c0_i32, %c0_i32_0 : i32, i32
  }
  func.func @transform_10(%arg0: i32) -> (i32, i32, i32) {
    %c0_i32 = arith.constant 0 : i32
    %c0_i32_0 = arith.constant 0 : i32
    %c0_i32_1 = arith.constant 0 : i32
    return %arg0, %c0_i32, %c0_i32_0 : i32, i32, i32
  }
}

</mosaic_0001>

<bundles_post_ra>
// kernel: tpu_custom_call.1
= control target key start
LH: loop header
LB: loop body
LE: loop exit
PB: predicated region body
PF: predicated region fallthrough
CT: control target
= control target key end

     0   :  { %s4750_s0 = inlined_call_operand.hbm [shape: f32[32,32], index: 0, kind: input, shape index: {}]   ;;  %s4751_s1 = inlined_call_operand.vmem [shape: bf16[32,8], index: 1, kind: input, shape index: {}]   ;;  %s4752_s2 = inlined_call_operand.hbm [shape: f32[2,8,256], index: 2, kind: input, shape index: {}]   ;;  %s4753_s3 = inlined_call_operand.hbm [shape: f32[2,32,256], index: 3, kind: input, shape index: {}]   ;;  %s4754_s4 = inlined_call_operand.hbm [shape: bf16[1536,256], index: 4, kind: input, shape index: {}]   ;;  %s4755_s5 = inlined_call_operand.vmem [shape: f32[1,256], index: 5, kind: input, shape index: {}]   ;;  %s4756_s6 = inlined_call_operand.vmem [shape: f32[1,256], index: 6, kind: input, shape index: {}]   ;;  %s4757_s7 = inlined_call_operand.hbm [shape: bf16[768,128], index: 7, kind: input, shape index: {}]   ;;  %s4758_s8 = inlined_call_operand.vmem [shape: f32[1,128], index: 8, kind: input, shape index: {}]   ;;  %s4759_s9 = inlined_call_operand.vmem [shape: f32[1,128], index: 9, kind: input, shape index: {}]   ;;  %s4760_s10 = inlined_call_operand.hbm [shape: bf16[2,32,128], index: 10, kind: output, shape index: {}]  }
   0x1   :  { %4773 = sst [smem:[#allocation19_spill]] %s4750_s0 }
   0x2   :  { %4774 = sst [smem:[#allocation20_spill]] %s4752_s2 }
   0x3   :  { %4775 = sst [smem:[#allocation21_spill]] %s4759_s9 }
   0x4   :  { %4776 = sst [smem:[#allocation22_spill]] %s4760_s10 }
   0x5   :  { %15 = vsyncpa [#allocation3], 0 }
   0x6   :  { %16 = vsyncpa [#allocation6], 0 }
   0x7   :  { %18 = vsyncpa [#allocation6 + $0x1], 0 }
   0x8   :  { %19 = vsyncpa [#allocation9], 0 }
   0x9   :  { %20 = vsyncpa [#allocation4], 0 }
   0xa   :  { %22 = vsyncpa [#allocation4 + $0x1], 0  ;;  %s4323_s13 = smov 0   ;;  %s4325_s14 = smov 0  }
   0xb   :  { %s4327_s15 = smov 0   ;;  %s4329_s16 = smov 0  }
   0xc LB: > { %4777 = sst [smem:[#allocation16_spill]] %s4239_s13  ;;  %s4344_s17 = sadd.s32 4294967295, %s4251_s16   ;;  %s4251_s16 = sphi %s4329_s16, %s4805_s16   ;;  %s4247_s15 = sphi %s4327_s15, %s4808_s15   ;;  %s4243_s14 = sphi %s4325_s14, %s4807_s14   ;;  %s4239_s13 = sphi %s4323_s13, %s4806_s13  }
   0xd   : > { %s3223_s18 = sadd.s32 4294967294, %s4251_s16   ;;  %p90_p0 = scmp.ne.s32.totalorder %s4243_s14, %s4239_s13 }
   0xe   : > { %p4768_p1 = scmp.eq.s32.totalorder %s4344_s17, 0  ;;  %p266_p2 = scmp.eq.s32.totalorder %s4344_s17, 1 }
   0xf   : > { %p272_p3 = scmp.eq.s32.totalorder %s3223_s18, 1  ;;  %p3224_p5 = scmp.ge.s32.totalorder %s4251_s16, 1 }
  0x10   : > { %p4353_p4 = por %p4768_p1, %p90_p0  ;;  %p279_p7 = scmp.lt.s32.totalorder %s4251_s16, 3 }
  0x11   : > { %p4358_p6 = por %p272_p3, %p90_p0  ;;  %s4253_s22 = smov [#allocation8]  }
  0x12   : > { %s4778_s19 = scalar_select %p4353_p4, 1, 0 }
  0x13   : > { %s4779_s20 = scalar_select %p4358_p6, 1, 0 }
  0x14   : > { %p4363_p8 = pnand %p3224_p5, %p279_p7  ;;  %s307_s23 = sshll.u32 %s4253_s22, 4  ;;  %s308_s23 = int_to_ptr.vmem [resolvable:$true] %s307_s23 }
  0x15   : > { %4780 = sst [smem:[#allocation17_spill]] %s4779_s20  ;;  %s4377_s25 = sadd.s32 1, %s4251_s16  }
  0x16   : > { %s4781_s21 = scalar_select %p4363_p8, 1, 0 }
  0x17   : > { %p3634_p10 = pneg %p4363_p8  ;;  %4783 = sst [smem:[#allocation18_spill]] %s4377_s25 }
  0x18   : > { %s77_s26 = sadd.s32 1, %s4247_s15  ;;  %s74_s27 = ssub.s32 %s4251_s16, %s4377_s25 }
  0x19   : > { %p4372_p11 = pnand %p3634_p10, %p4768_p1  ;;  %s4056_s28 = scalar_lea.vmem %s308_s23, 24576 }
  0x1a   : > { %p4057_p13 = scmp.ne.s32.totalorder %s308_s23, %s4056_s28  ;;  %p4064_p5 = scmp.lt.s32.totalorder %s308_s23, %s308_s23 }
  0x1b   : > { %p4769_p12 = pneg %p4372_p11  ;;  %p4065_p7 = scmp.lt.s32.totalorder %s4056_s28, %s4056_s28 }
  0x1d   : > { %p4059_p0 = pnand %p4057_p13, %p4769_p12  ;;  %p4066_p10 = por %p4065_p7, %p4064_p5 }
  0x1f   : > { %p4060_p3 = pneg %p4059_p0 }
  0x21   : > { %p4067_p9 = pnand %p4066_p10, %p4060_p3 }
  0x23   : > { %4070 = shalt.err (!%p4067_p9)
}
  0x24   : > { %s4766_s29 = smov 128   ;;  %s4767_s30 = smov 8  }
  0x25   : > { %3640 = dma.hbm_to_vmem [thread:$0]  (!%p4372_p11), %s4754_s4, 24576, %s308_s23, [#allocation9], %s4766_s29, %s4766_s29, %s4767_s30  }
  0x26   : > { %p75_p9 = scmp.eq.s32.totalorder %s74_s27, 0  ;;  %p84_p13 = scmp.ne.s32.totalorder %s4247_s15, %s4243_s14 }
  0x27   : > { %p85_p0 = scmp.eq.s32.totalorder %s4251_s16, 0  ;;  %p3658_p3 = scmp.lt.s32.totalorder %s4251_s16, 2 }
  0x28   : > { %s4400_s18 = scalar_select %p75_p9, %s4247_s15, %s77_s26  }
  0x29   : > { %p86_p5 = por %p85_p0, %p84_p13  ;;  %p4404_p7 = por %p266_p2, %p84_p13 }
  0x2a   : > { %s346_s28 = sand.u32 1, %s4251_s16   ;;  %s348_s25 = sand.u32 1, %s4247_s15  }
  0x2b   : > { %s4784_s22 = scalar_select %p4404_p7, 1, 0 }
  0x2c   : > { %s3229_s20 = sshll.u32 %s348_s25, 4  ;;  %s3510_s13 = sshll.u32 %s4251_s16, 8 }
  0x2d   : > { %s4785_s2 = sld [smem:[#allocation20_spill]]  ;;  %s350_s26 = scalar_lea.vmem [#allocation5], %s3229_s20 }
  0x2e   : > { %s358_s27 = sshll.u32 %s350_s26, 4  ;;  %p4418_p2 = pnand %p3658_p3, %p86_p5  ;;  %s4416_s27 = int_to_ptr.vmem [resolvable:$true] %s358_s27 }
  0x2f   : > { %s3232_s12 = sshll.u32 %s348_s25, 6  ;;  %s4422_s29 = scalar_lea.sflag [#allocation6], %s346_s28 }
  0x30   : > { %p4073_p9 = pneg %p4418_p2 }
  0x33   : > { %s4414_s23 = scalar_lea.hbm %s4785_s2, %s3510_s13  ;;  %s4076_s13 = scalar_lea.hbm %s4785_s2, 512 }
  0x34   : > { %s4071_s30 = scalar_lea.hbm %s4414_s23, 256  ;;  %p4077_p3 = scmp.lt.s32.totalorder %s4414_s23, %s4785_s2 }
  0x35   : > { %p4072_p10 = scmp.ne.s32.totalorder %s4414_s23, %s4071_s30  ;;  %p4078_p5 = scmp.lt.s32.totalorder %s4076_s13, %s4071_s30 }
  0x37   : > { %p4074_p13 = pnand %p4073_p9, %p4072_p10  ;;  %p4079_p1 = por %p4078_p5, %p4077_p3 }
  0x39   : > { %p4075_p0 = pneg %p4074_p13 }
  0x3b   : > { %p4080_p12 = pnand %p4079_p1, %p4075_p0 }
  0x3d   : > { %4083 = shalt.err (!%p4080_p12)
}
  0x3e   : > { %s4084_s25 = scalar_lea.vmem %s4416_s27, 256  ;;  %s4256_s28 = smov [#allocation5]  }
  0x3f   : > { %p4085_p6 = scmp.ne.s32.totalorder %s4416_s27, %s4084_s25  ;;  %s4089_s9 = sshll.u32 %s4256_s28, 4  ;;  %s4090_s9 = int_to_ptr.vmem [resolvable:$false] %s4089_s9 }
  0x40   : > { %s4091_s10 = scalar_lea.vmem %s4090_s9, 512  ;;  %p4092_p7 = scmp.lt.s32.totalorder %s4416_s27, %s4090_s9 }
  0x41   : > { %p4087_p10 = pnand %p4085_p6, %p4073_p9  ;;  %p4093_p4 = scmp.lt.s32.totalorder %s4091_s10, %s4084_s25 }
  0x43   : > { %p4088_p13 = pneg %p4087_p10  ;;  %p4094_p8 = por %p4093_p4, %p4092_p7 }
  0x45   : > { %p4095_p3 = pnand %p4094_p8, %p4088_p13 }
  0x47   : > { %4098 = shalt.err (!%p4095_p3)
}
  0x48   : > { %3647 = dma.hbm_to_vmem [thread:$0]  (!%p4418_p2), %s4414_s23, 256, %s4416_s27, %s4422_s29  }
  0x49   : > { %s369_s30 = scalar_lea.vmem [#allocation7], %s3232_s12  ;;  %s4257_s20 = smov [#allocation2]  }
  0x4a   : > { %s376_s13 = sshll.u32 %s369_s30, 4  ;;  %s291_s26 = sshll.u32 %s4257_s20, 4  ;;  %s4449_s13 = int_to_ptr.vmem [resolvable:$true] %s376_s13  ;;  %s292_s26 = int_to_ptr.vmem [resolvable:$true] %s291_s26 }
  0x4b   : > { %s4110_s28 = scalar_lea.vmem %s292_s26, 512  ;;  %p4787_p4 = pneg %p4372_p11 }
  0x4c   : > { %p4111_p1 = scmp.ne.s32.totalorder %s292_s26, %s4110_s28  ;;  %p4118_p12 = scmp.lt.s32.totalorder %s292_s26, %s292_s26 }
  0x4d   : > { %p4119_p7 = scmp.lt.s32.totalorder %s4110_s28, %s4110_s28 }
  0x4e   : > { %p4113_p6 = pnand %p4111_p1, %p4787_p4 }
  0x4f   : > { %p4120_p0 = por %p4119_p7, %p4118_p12 }
  0x50   : > { %p4114_p8 = pneg %p4113_p6 }
  0x52   : > { %p4121_p5 = pnand %p4120_p0, %p4114_p8 }
  0x54   : > { %4124 = shalt.err (!%p4121_p5)
}
  0x55   : > { %s4788_s23 = smov 8   ;;  %s4789_s27 = smov 128  }
  0x56   : > { %s4790_s0 = sld [smem:[#allocation19_spill]]  ;;  %s4258_s9 = smov [#allocation10]  }
  0x57   : > { %s326_s10 = sshll.u32 %s4258_s9, 4  ;;  %s3511_s30 = sshll.u32 %s4251_s16, 10  ;;  %s327_s10 = int_to_ptr.vmem [resolvable:$true] %s326_s10 }
  0x58   : > { %s4136_s20 = scalar_lea.vmem %s327_s10, 6144  ;;  %p4791_p13 = pmov %p4787_p4 }
  0x59   : > { %p4137_p10 = scmp.ne.s32.totalorder %s327_s10, %s4136_s20  ;;  %p4144_p4 = scmp.lt.s32.totalorder %s327_s10, %s327_s10 }
  0x5a   : > { %p4145_p6 = scmp.lt.s32.totalorder %s4136_s20, %s4136_s20 }
  0x5b   : > { %p4139_p3 = pnand %p4137_p10, %p4791_p13 }
  0x5c   : > { %3637 = dma.hbm_to_vmem [thread:$0]  (!%p4372_p11), %s4790_s0, 512, %s292_s26, [#allocation3], %s4789_s27, %s4789_s27, %s4788_s23  }
  0x5d   : > { %p4140_p1 = pneg %p4139_p3  ;;  %p4146_p8 = por %p4145_p6, %p4144_p4 }
  0x5f   : > { %p4147_p12 = pnand %p4146_p8, %p4140_p1 }
  0x61   : > { %4150 = shalt.err (!%p4147_p12)
}
  0x62   : > { %s4259_s28 = smov 64   ;;  %s4260_s12 = smov 4  }
  0x63   : > { %3643 = dma.hbm_to_vmem [thread:$0]  (!%p4372_p11), %s4757_s7, 6144, %s327_s10, [#allocation9], %s4259_s28, %s4259_s28, %s4260_s12  }
  0x64   : > { %s4474_s9 = scalar_lea.hbm %s4753_s3, %s3511_s30  ;;  %s4156_s2 = scalar_lea.hbm %s4753_s3, 2048 }
  0x65   : > { %s4151_s20 = scalar_lea.hbm %s4474_s9, 1024  ;;  %p4157_p11 = scmp.lt.s32.totalorder %s4474_s9, %s4753_s3 }
  0x66   : > { %p4152_p7 = scmp.ne.s32.totalorder %s4474_s9, %s4151_s20  ;;  %p4158_p10 = scmp.lt.s32.totalorder %s4156_s2, %s4151_s20 }
  0x68   : > { %p4154_p0 = pnand %p4152_p7, %p4073_p9  ;;  %p4159_p13 = por %p4158_p10, %p4157_p11 }
  0x6a   : > { %p4155_p5 = pneg %p4154_p0 }
  0x6c   : > { %p4160_p3 = pnand %p4159_p13, %p4155_p5 }
  0x6e   : > { %4163 = shalt.err (!%p4160_p3)
}
  0x6f   : > { %s4164_s30 = scalar_lea.vmem %s4449_s13, 1024  ;;  %s4261_s0 = smov [#allocation7]  }
  0x70   : > { %p4165_p1 = scmp.ne.s32.totalorder %s4449_s13, %s4164_s30  ;;  %s4169_s28 = sshll.u32 %s4261_s0, 4  ;;  %s4170_s28 = int_to_ptr.vmem [resolvable:$false] %s4169_s28 }
  0x71   : > { %s4171_s12 = scalar_lea.vmem %s4170_s28, 2048  ;;  %p4172_p8 = scmp.lt.s32.totalorder %s4449_s13, %s4170_s28 }
  0x72   : > { %p4167_p4 = pnand %p4165_p1, %p4073_p9  ;;  %p4173_p12 = scmp.lt.s32.totalorder %s4171_s12, %s4164_s30 }
  0x74   : > { %p4168_p6 = pneg %p4167_p4  ;;  %p4174_p7 = por %p4173_p12, %p4172_p8 }
  0x76   : > { %p4175_p0 = pnand %p4174_p7, %p4168_p6 }
  0x78   : > { %4178 = shalt.err (!%p4175_p0)
}
  0x79   : > { %s4262_s2 = smov 256   ;;  %s4263_s23 = smov 16  }
  0x7a   : > { %3650 = dma.hbm_to_vmem [thread:$0]  (!%p4418_p2), %s4474_s9, 1024, %s4449_s13, %s4422_s29, %s4262_s2, %s4262_s2, %s4263_s23  }
  0x7b   : > { %p4792_p9 = scmp.ne.s32.totalorder %s4781_s21, 0 }
  0x7c   : > { %p4793_p5 = scmp.eq.s32.totalorder (!%p4792_p9), %s4344_s17, 0 }
  0x7d   : > { %388 = sbr.rel (%p4792_p9) target bundleno = 1675 (0x68b), region = 60 }
  0x82   : > { %4222 = dma.done.wait (%p4793_p5), [#allocation3], 512   ;;  %p4794_p11 = pmov %p4793_p5 }
  0x83   : > { %s394_s27 = sand.u32 1, %s4344_s17   ;;  %s4507_s25 = sand.u32 1, %s4243_s14  }
  0x84   : > { %4224 = vsyncadd (%p4794_p11), [#allocation3], 4294966784  ;;  %s3237_s20 = sshll.u32 %s4507_s25, 4  ;;  %s395_s11 = scalar_lea.sflag [#allocation6], %s394_s27 }
  0x85   : > { %s398_s29 = scalar_lea.vmem [#allocation5], %s3237_s20  ;;  %p4795_p2 = scmp.ne.s32.totalorder %s4778_s19, 0 }
  0x87   : > { %4226 = dma.done.wait (%p4795_p2), %s395_s11, 1280  }
  0x88   : > { %4228 = vsyncadd (%p4795_p2), %s395_s11, 4294966016  ;;  %s3238_s21 = sshll.u32 %s4507_s25, 6  ;;  %p4796_p10 = pmov %p4793_p5 }
  0x89   : > { %s4517_s13 = scalar_lea.vmem [#allocation7], %s3238_s21 }
  0x8a   : > { %4230 = dma.done.wait (%p4796_p10), [#allocation9], 30720   ;;  %p4797_p13 = pmov %p4793_p5 }
  0x8b   : > { %v4264_v0 = vmov 0   ;;  %v469_v1 = vld [vmem:[%s398_s29 + $0x8] sm:$0xff]  ;;  %vm489_vm0 = vcmask 1043456   ;;  %v468_v2 = vld [vmem:[%s398_s29] sm:$0xff]  ;;  %vm482_vm1 = vcmask 64512   ;;  %vm759_vm2 = vcmask 261120  }
  0x8c   : > { %4232 = vsyncadd (%p4797_p13), [#allocation9], 4294936576  ;;  %528 = vmatprep.mubr.bf16.mxu0 %v4264_v0  ;;  %808 = vmatprep.mubr.bf16.mxu1 %v4264_v0  ;;  %v471_v3 = vpack.c.bf16 %v469_v1, %v469_v1  ;;  %v470_v4 = vpack.c.bf16 %v468_v2, %v468_v2  ;;  %v3707_v5 = vld [vmem:[%s4751_s1] sm:$0xff]   ;;  %v3708_v7 = vld [vmem:[%s4751_s1 + $0x8] sm:$0xff]   ;;  %s4798_s11 = sld [smem:[#allocation21_spill]]  ;;  %s456_s29 = scalar_lea.vmem [#allocation11], %s3237_s20 }
  0x8d   : > { %v558_v18 = vld [vmem:[%s4517_s13 + $0x28] sm:$0xff]  ;;  %v560_v19 = vld [vmem:[%s4517_s13 + $0x38] sm:$0xff]  ;;  %v458_v21 = vld [vmem:[#allocation2] sm:$0xff]  ;;  %s3516_s21 = sshll.u32 %s4344_s17, 8  ;;  %s4799_s24 = sld [smem:[#allocation22_spill]] }
  0x8e   : > { %3244 = vmatprep.subr.msk.bf16.mxu0 %vm489_vm0, %v471_v3  ;;  %v491_v6 = vsel %vm489_vm0, %v470_v4, 0  ;;  %v459_v22 = vld [vmem:[#allocation2 + $0x8] sm:$0xff]  ;;  %v460_v23 = vld [vmem:[#allocation2 + $0x10] sm:$0xff]  ;;  %v461_v24 = vld [vmem:[#allocation2 + $0x18] sm:$0xff]  ;;  %v4547_v25 = vpack.c.bf16 %v560_v19, %v558_v18  ;;  %s3086_s20 = scalar_lea.sflag [#allocation4], %s4507_s25  ;;  %p4800_p1 = scmp.ne.s32.totalorder %s4784_s22, 0 }
  0x8f   : > { %511 = vmatpush1.bf16.msra.mxu0 %v491_v6  ;;  %v557_v26 = vld [vmem:[%s4517_s13 + $0x20] sm:$0xff]  ;;  %v559_v27 = vld [vmem:[%s4517_s13 + $0x30] sm:$0xff]  ;;  %v554_v29 = vld [vmem:[%s4517_s13 + $0x8] sm:$0xff]  ;;  %v4555_v31 = vpack.c.bf16 %v459_v22, %v458_v21  ;;  %v4557_v32 = vpack.c.bf16 %v461_v24, %v460_v23  ;;  %s4265_s17 = smov [#allocation11]  }
  0x90   : > { %v556_v30 = vld [vmem:[%s4517_s13 + $0x18] sm:$0xff]  ;;  %v4561_v33 = vpack.c.bf16 %v559_v27, %v557_v26  ;;  %v553_v35 = vld [vmem:[%s4517_s13] sm:$0xff]  ;;  %v555_v36 = vld [vmem:[%s4517_s13 + $0x10] sm:$0xff]  ;;  %s3099_s13 = sshll.u32 %s456_s29, 4  ;;  %s4183_s30 = sshll.u32 %s4265_s17, 4  ;;  %s4707_s13 = int_to_ptr.vmem [resolvable:$true] %s3099_s13  ;;  %s4184_s30 = int_to_ptr.vmem [resolvable:$false] %s4183_s30 }
  0x91   : > { %v4564_v34 = vpack.c.bf16 %v556_v30, %v554_v29  ;;  %v4573_v37 = vpack.c.bf16 %v555_v36, %v553_v35  ;;  %v3711_v51 = vld [vmem:[#allocation8 + $0x74] ss:$8 sps:$4 sm:$0xff]   ;;  %v3709_v55 = vld [vmem:[#allocation8 + $0x70] ss:$8 sps:$4 sm:$0xff]   ;;  %v3714_v56 = vld [vmem:[#allocation8 + $0x64] ss:$8 sps:$4 sm:$0xff]   ;;  %p4186_p8 = scmp.lt.s32.totalorder %s4707_s13, %s4184_s30 }
  0x92   : > { %3245 = vmatmul.mubr.msk.bf16.vlgmr.msra.gmra.mxu0 %vm482_vm1, %v3707_v5  ;;  %v3712_v59 = vld [vmem:[#allocation8 + $0x60] ss:$8 sps:$4 sm:$0xff]   ;;  %v3717_v60 = vld [vmem:[#allocation8 + $0x54] ss:$8 sps:$4 sm:$0xff]   ;;  %v3715_v63 = vld [vmem:[#allocation8 + $0x50] ss:$8 sps:$4 sm:$0xff]  }
  0x93   : > { %538 = vmatprep.mubr.bf16.mxu0 %v4264_v0  ;;  %v3720_v3 = vld [vmem:[#allocation8 + $0x44] ss:$8 sps:$4 sm:$0xff]   ;;  %v3718_v5 = vld [vmem:[#allocation8 + $0x40] ss:$8 sps:$4 sm:$0xff]   ;;  %v3723_v6 = vld [vmem:[#allocation8 + $0x34] ss:$8 sps:$4 sm:$0xff]   ;;  %s4705_s26 = scalar_lea.hbm %s4799_s24, %s3516_s21 }
  0x94   : > { %v3738_v18 = vld [vmem:[#allocation8 + $0x154] ss:$8 sps:$4 sm:$0xff]   ;;  %v3733_v19 = vld [vmem:[#allocation8 + $0x10] ss:$8 sps:$4 sm:$0xff]   ;;  %v3741_v22 = vld [vmem:[#allocation8 + $0x4] ss:$8 sps:$4 sm:$0xff]  }
  0x95   : > { %v3736_v21 = vld [vmem:[#allocation8 + $0x150] ss:$8 sps:$4 sm:$0xff]   ;;  %v3744_v23 = vld [vmem:[#allocation8 + $0x144] ss:$8 sps:$4 sm:$0xff]   ;;  %v3739_v24 = vld [vmem:[#allocation8] ss:$8 sps:$4 sm:$0xff]  }
  0x96   : > { %v3742_v26 = vld [vmem:[#allocation8 + $0x140] ss:$8 sps:$4 sm:$0xff]   ;;  %v3747_v27 = vld [vmem:[#allocation8 + $0xf4] ss:$8 sps:$4 sm:$0xff]   ;;  %v3745_v30 = vld [vmem:[#allocation8 + $0xf0] ss:$8 sps:$4 sm:$0xff]  }
  0x97   : > { %v3750_v29 = vld [vmem:[#allocation8 + $0x134] ss:$8 sps:$4 sm:$0xff]   ;;  %v3748_v35 = vld [vmem:[#allocation8 + $0x130] ss:$8 sps:$4 sm:$0xff]   ;;  %v3753_v36 = vld [vmem:[#allocation8 + $0xe4] ss:$8 sps:$4 sm:$0xff]  }
  0x98   : > { %s4179_s10 = scalar_lea.vmem %s4707_s13, 256  ;;  %s4185_s0 = scalar_lea.vmem %s4184_s30, 512 }
  0x99   : > { %p4180_p3 = scmp.ne.s32.totalorder %s4707_s13, %s4179_s10  ;;  %p4187_p12 = scmp.lt.s32.totalorder %s4185_s0, %s4179_s10 }
  0x9a   : > { %3246 = vmatmul.mubr.msk.bf16.gmra.mxu0 %vm482_vm1, %v3708_v7  ;;  %v3726_v7 = vld [vmem:[#allocation8 + $0x174] ss:$8 sps:$4 sm:$0xff]  }
  0x9b   : > { %798 = vmatprep.mubr.bf16.mxu0 %v4264_v0  ;;  %p4181_p4 = pnand %p4180_p3, %p4800_p1  ;;  %p4188_p7 = por %p4187_p12, %p4186_p8 }
  0x9d   : > { %p4182_p6 = pneg %p4181_p4 }
  0x9f   : > { %p4189_p0 = pnand %p4188_p7, %p4182_p6 }
 0x152   : > { %v530_v8 = vpop.f32.mrf.mxu0 }
 0x154   : > { %v532_v9 = vpop.f32.mrf.mxu0 }
 0x156   : > { %v534_v10 = vpop.f32.mrf.mxu0 }
 0x157   : > { %v4551_v28 = vpack.c.bf16 %v534_v10, %v530_v8  ;;  %v3724_v10 = vld [vmem:[#allocation8 + $0x170] ss:$8 sps:$4 sm:$0xff]  }
 0x158   : > { %v536_v11 = vpop.f32.mrf.mxu0 }
 0x159   : > { %v4539_v20 = vpack.c.bf16 %v536_v11, %v532_v9  ;;  %v3721_v9 = vld [vmem:[#allocation8 + $0x30] ss:$8 sps:$4 sm:$0xff]   ;;  %v3729_v11 = vld [vmem:[#allocation8 + $0x24] ss:$8 sps:$4 sm:$0xff]  }
 0x15a   : > { %v540_v12 = vpop.f32.mrf.mxu0 }
 0x15c   : > { %v542_v13 = vpop.f32.mrf.mxu0 }
 0x15e   : > { %v544_v14 = vpop.f32.mrf.mxu0 }
 0x15f   : > { %v4535_v17 = vpack.c.bf16 %v544_v14, %v540_v12  ;;  %v3732_v12 = vld [vmem:[#allocation8 + $0x164] ss:$8 sps:$4 sm:$0xff]   ;;  %v3730_v14 = vld [vmem:[#allocation8 + $0x160] ss:$8 sps:$4 sm:$0xff]  }
 0x160   : > { %v546_v15 = vpop.f32.mrf.mxu0 }
 0x161   : > { %v4533_v16 = vpack.c.bf16 %v546_v15, %v542_v13  ;;  %v3727_v13 = vld [vmem:[#allocation8 + $0x20] ss:$8 sps:$4 sm:$0xff]   ;;  %v3735_v15 = vld [vmem:[#allocation8 + $0x14] ss:$8 sps:$4 sm:$0xff]  }
 0x163   : > { %778 = vmatprep.subr.bf16.mxu0 %v4533_v16  ;;  %3612 = vmatprep.subr.bf16.mxu1 %v4533_v16 }
 0x164   : > { %779 = vmatpush1.bf16.msra.mxu0 %v4535_v17  ;;  %3614 = vmatpush1.bf16.msra.mxu1 %v4535_v17 }
 0x165   : > { %780 = vmatprep.subr.bf16.mxu0 %v4539_v20  ;;  %3613 = vmatprep.subr.bf16.mxu1 %v4539_v20 }
 0x168   : > { %781 = vmatpush1.bf16.msra.mxu0 %v4551_v28  ;;  %3615 = vmatpush1.bf16.msra.mxu1 %v4551_v28 }
 0x169   : > { %831 = vmatprep.subr.bf16.mxu0 %v4547_v25 }
 0x16b   : > { %3247 = vmatmul.mubr.msk.bf16.vlgmr.msra.gmra.mxu0 %vm759_vm2, %v4555_v31  ;;  %3248 = vmatmul.mubr.msk.bf16.vlgmr.msra.gmra.mxu1 %vm759_vm2, %v4557_v32 }
 0x16c   : > { %832 = vmatpush1.bf16.msra.mxu0 %v4561_v33  ;;  %851 = vmatprep.mubr.bf16.mxu0 %v4264_v0 }
 0x16d   : > { %833 = vmatprep.subr.bf16.mxu0 %v4564_v34  ;;  %912 = vmatprep.mubr.bf16.mxu1 %v4264_v0 }
 0x170   : > { %834 = vmatpush1.bf16.msra.mxu0 %v4573_v37 }
 0x173   : > { %3249 = vmatmul.mubr.msk.bf16.vlgmr.msra.gmra.mxu0 %vm759_vm2, %v4555_v31 }
 0x174   : > { %861 = vmatprep.mubr.bf16.mxu0 %v4264_v0 }
 0x17b   : > { %3250 = vmatmul.mubr.msk.bf16.gmra.mxu0 %vm759_vm2, %v4557_v32 }
 0x17c   : > { %965 = vmatprep.mubr.bf16.mxu0 %v4264_v0 }
 0x22b   : > { %v800_v38 = vpop.f32.mrf.mxu0  ;;  %v810_v39 = vpop.f32.mrf.mxu1 }
 0x22d   : > { %v802_v40 = vpop.f32.mrf.mxu0  ;;  %v812_v41 = vpop.f32.mrf.mxu1 }
 0x22f   : > { %v804_v42 = vpop.f32.mrf.mxu0  ;;  %v814_v43 = vpop.f32.mrf.mxu1 }
 0x230   : > { %v4585_v44 = vpack.c.bf16 %v814_v43, %v810_v39  ;;  %v4594_v52 = vpack.c.bf16 %v804_v42, %v800_v38  ;;  %v3756_v38 = vld [vmem:[#allocation8 + $0x124] ss:$8 sps:$4 sm:$0xff]   ;;  %v3751_v39 = vld [vmem:[#allocation8 + $0xe0] ss:$8 sps:$4 sm:$0xff]   ;;  %v3762_v42 = vld [vmem:[#allocation8 + $0x114] ss:$8 sps:$4 sm:$0xff]  }
 0x231   : > { %v806_v45 = vpop.f32.mrf.mxu0  ;;  %v816_v46 = vpop.f32.mrf.mxu1  ;;  %v3757_v43 = vld [vmem:[#allocation8 + $0xd0] ss:$8 sps:$4 sm:$0xff]  }
 0x232   : > { %v4587_v47 = vpack.c.bf16 %v816_v46, %v812_v41  ;;  %v4589_v49 = vpack.c.bf16 %v806_v45, %v802_v40  ;;  %v3754_v40 = vld [vmem:[#allocation8 + $0x120] ss:$8 sps:$4 sm:$0xff]   ;;  %v3759_v41 = vld [vmem:[#allocation8 + $0xd4] ss:$8 sps:$4 sm:$0xff]   ;;  %v3760_v45 = vld [vmem:[#allocation8 + $0x110] ss:$8 sps:$4 sm:$0xff]  }
 0x233   : > { %v853_v48 = vpop.f32.mrf.mxu0  ;;  %v3765_v46 = vld [vmem:[#allocation8 + $0xc4] ss:$8 sps:$4 sm:$0xff]  }
 0x234   : > { %892 = vmatprep.subr.bf16.mxu1 %v4587_v47 }
 0x235   : > { %v855_v50 = vpop.f32.mrf.mxu0  ;;  %893 = vmatpush1.bf16.msra.mxu1 %v4585_v44 }
 0x236   : > { %894 = vmatprep.subr.bf16.mxu1 %v4589_v49 }
 0x237   : > { %v857_v53 = vpop.f32.mrf.mxu0 }
 0x238   : > { %v4612_v8 = vpack.c.bf16 %v857_v53, %v853_v48  ;;  %v3768_v48 = vld [vmem:[#allocation8 + $0x104] ss:$8 sps:$4 sm:$0xff]   ;;  %v3771_v53 = vld [vmem:[#allocation8 + $0xb4] ss:$8 sps:$4 sm:$0xff]  }
 0x239   : > { %v859_v54 = vpop.f32.mrf.mxu0  ;;  %895 = vmatpush1.bf16.msra.mxu1 %v4594_v52 }
 0x23a   : > { %2002 = vmatprep.subr.bf16.mxu1 %v3711_v51  ;;  %v4604_v4 = vpack.c.bf16 %v859_v54, %v855_v50  ;;  %v3763_v50 = vld [vmem:[#allocation8 + $0xc0] ss:$8 sps:$4 sm:$0xff]   ;;  %v3774_v54 = vld [vmem:[#allocation8 + $0x1f4] ss:$8 sps:$4 sm:$0xff]  }
 0x23b   : > { %v863_v57 = vpop.f32.mrf.mxu0  ;;  %v3766_v51 = vld [vmem:[#allocation8 + $0x100] ss:$8 sps:$4 sm:$0xff]  }
 0x23c   : > { %3251 = vmatmul.mubr.msk.bf16.vlgmr.msra.gmra.mxu1 %vm759_vm2, %v4555_v31 }
 0x23d   : > { %v865_v58 = vpop.f32.mrf.mxu0  ;;  %2003 = vmatpush1.bf16.msra.mxu1 %v3709_v55  ;;  %922 = vmatprep.mubr.bf16.mxu1 %v4264_v0  ;;  %v3769_v55 = vld [vmem:[#allocation8 + $0xb0] ss:$8 sps:$4 sm:$0xff]  }
 0x23e   : > { %2004 = vmatprep.subr.bf16.mxu1 %v3714_v56  ;;  %v3772_v56 = vld [vmem:[#allocation8 + $0x1f0] ss:$8 sps:$4 sm:$0xff]  }
 0x23f   : > { %v867_v61 = vpop.f32.mrf.mxu0 }
 0x240   : > { %v4602_v2 = vpack.c.bf16 %v867_v61, %v863_v57  ;;  %v3777_v57 = vld [vmem:[#allocation8 + $0xa4] ss:$8 sps:$4 sm:$0xff]   ;;  %v3783_v61 = vld [vmem:[#allocation8 + $0x94] ss:$8 sps:$4 sm:$0xff]  }
 0x241   : > { %v869_v62 = vpop.f32.mrf.mxu0  ;;  %2005 = vmatpush1.bf16.msra.mxu1 %v3712_v59  ;;  %v3775_v59 = vld [vmem:[#allocation8 + $0xa0] ss:$8 sps:$4 sm:$0xff]  }
 0x242   : > { %v4600_v1 = vpack.c.bf16 %v869_v62, %v865_v58  ;;  %2006 = vmatprep.subr.bf16.mxu1 %v3717_v60  ;;  %v3780_v58 = vld [vmem:[#allocation8 + $0x1e4] ss:$8 sps:$4 sm:$0xff]   ;;  %v3778_v60 = vld [vmem:[#allocation8 + $0x1e0] ss:$8 sps:$4 sm:$0xff]   ;;  %v3786_v62 = vld [vmem:[#allocation8 + $0x1d4] ss:$8 sps:$4 sm:$0xff]  }
 0x244   : > { %3252 = vmatmul.mubr.msk.bf16.gmra.mxu1 %vm759_vm2, %v4557_v32  ;;  %945 = vmatprep.subr.bf16.mxu0 %v4600_v1 }
 0x245   : > { %946 = vmatpush1.bf16.msra.mxu0 %v4602_v2  ;;  %2007 = vmatpush1.bf16.msra.mxu1 %v3715_v63  ;;  %v3781_v63 = vld [vmem:[#allocation8 + $0x90] ss:$8 sps:$4 sm:$0xff]  }
 0x246   : > { %2034 = vmatprep.mubr.bf16.mxu1 %v4539_v20  ;;  %947 = vmatprep.subr.bf16.mxu0 %v4604_v4 }
 0x247   : > { %2008 = vmatprep.subr.bf16.mxu1 %v3720_v3  ;;  %v3784_v3 = vld [vmem:[#allocation8 + $0x1d0] ss:$8 sps:$4 sm:$0xff]  }
 0x249   : > { %948 = vmatpush1.bf16.msra.mxu0 %v4612_v8  ;;  %2009 = vmatpush1.bf16.msra.mxu1 %v3718_v5  ;;  %v3789_v5 = vld [vmem:[#allocation8 + $0x84] ss:$8 sps:$4 sm:$0xff]  }
 0x24a   : > { %2010 = vmatprep.subr.bf16.mxu1 %v3723_v6  ;;  %2055 = vmatprep.subr.bf16.mxu0 %v3726_v7  ;;  %v3792_v6 = vld [vmem:[#allocation8 + $0x1c4] ss:$8 sps:$4 sm:$0xff]   ;;  %v3787_v7 = vld [vmem:[#allocation8 + $0x80] ss:$8 sps:$4 sm:$0xff]  }
 0x24c   : > { %3253 = vmatmul.mubr.msk.bf16.vlgmr.msra.gmra.mxu0 %vm759_vm2, %v4555_v31 }
 0x24d   : > { %2011 = vmatpush1.bf16.msra.mxu1 %v3721_v9  ;;  %2056 = vmatpush1.bf16.msra.mxu0 %v3724_v10  ;;  %v3790_v9 = vld [vmem:[#allocation8 + $0x1c0] ss:$8 sps:$4 sm:$0xff]   ;;  %v3795_v10 = vld [vmem:[#allocation8 + $0x1b4] ss:$8 sps:$4 sm:$0xff]  }
 0x24e   : > { %2012 = vmatprep.subr.bf16.mxu1 %v3729_v11  ;;  %2057 = vmatprep.subr.bf16.mxu0 %v3732_v12  ;;  %v3798_v11 = vld [vmem:[#allocation8 + $0x274] ss:$8 sps:$4 sm:$0xff]   ;;  %v3793_v12 = vld [vmem:[#allocation8 + $0x1b0] ss:$8 sps:$4 sm:$0xff]  }
 0x24f   : > { %975 = vmatprep.mubr.bf16.mxu0 %v4264_v0 }
 0x251   : > { %2013 = vmatpush1.bf16.msra.mxu1 %v3727_v13  ;;  %2058 = vmatpush1.bf16.msra.mxu0 %v3730_v14  ;;  %v3796_v13 = vld [vmem:[#allocation8 + $0x270] ss:$8 sps:$4 sm:$0xff]   ;;  %v3801_v14 = vld [vmem:[#allocation8 + $0x1a4] ss:$8 sps:$4 sm:$0xff]  }
 0x252   : > { %2014 = vmatprep.subr.bf16.mxu1 %v3735_v15  ;;  %2059 = vmatprep.subr.bf16.mxu0 %v3738_v18  ;;  %v3804_v15 = vld [vmem:[#allocation8 + $0x264] ss:$8 sps:$4 sm:$0xff]   ;;  %v3799_v18 = vld [vmem:[#allocation8 + $0x1a0] ss:$8 sps:$4 sm:$0xff]  }
 0x254   : > { %3254 = vmatmul.mubr.msk.bf16.gmra.mxu0 %vm759_vm2, %v4557_v32 }
 0x255   : > { %2015 = vmatpush1.bf16.msra.mxu1 %v3733_v19  ;;  %2060 = vmatpush1.bf16.msra.mxu0 %v3736_v21  ;;  %v3802_v19 = vld [vmem:[#allocation8 + $0x260] ss:$8 sps:$4 sm:$0xff]   ;;  %v3807_v21 = vld [vmem:[#allocation8 + $0x194] ss:$8 sps:$4 sm:$0xff]  }
 0x256   : > { %2016 = vmatprep.subr.bf16.mxu1 %v3741_v22  ;;  %2061 = vmatprep.subr.bf16.mxu0 %v3744_v23  ;;  %v3810_v22 = vld [vmem:[#allocation8 + $0x254] ss:$8 sps:$4 sm:$0xff]   ;;  %v3805_v23 = vld [vmem:[#allocation8 + $0x190] ss:$8 sps:$4 sm:$0xff]  }
 0x257   : > { %2087 = vmatprep.mubr.bf16.mxu0 %v4564_v34 }
 0x259   : > { %2017 = vmatpush1.bf16.msra.mxu1 %v3739_v24  ;;  %2062 = vmatpush1.bf16.msra.mxu0 %v3742_v26  ;;  %v3808_v24 = vld [vmem:[#allocation8 + $0x250] ss:$8 sps:$4 sm:$0xff]   ;;  %v3813_v26 = vld [vmem:[#allocation8 + $0x184] ss:$8 sps:$4 sm:$0xff]  }
 0x25a   : > { %2018 = vmatprep.subr.bf16.mxu1 %v3747_v27  ;;  %2063 = vmatprep.subr.bf16.mxu0 %v3750_v29  ;;  %v3816_v27 = vld [vmem:[#allocation8 + $0x244] ss:$8 sps:$4 sm:$0xff]   ;;  %v3811_v29 = vld [vmem:[#allocation8 + $0x180] ss:$8 sps:$4 sm:$0xff]  }
 0x25d   : > { %2019 = vmatpush2.bf16.msra.mxu1 %v3745_v30  ;;  %2064 = vmatpush1.bf16.msra.mxu0 %v3748_v35  ;;  %v3814_v30 = vld [vmem:[#allocation8 + $0x240] ss:$8 sps:$4 sm:$0xff]   ;;  %v3822_v35 = vld [vmem:[#allocation8 + $0x374] ss:$8 sps:$4 sm:$0xff]  }
 0x25e   : > { %2020 = vmatprep.subr.bf16.mxu1 %v3753_v36  ;;  %2065 = vmatprep.subr.bf16.mxu0 %v3756_v38  ;;  %v3819_v36 = vld [vmem:[#allocation8 + $0x234] ss:$8 sps:$4 sm:$0xff]   ;;  %v3820_v38 = vld [vmem:[#allocation8 + $0x370] ss:$8 sps:$4 sm:$0xff]  }
 0x261   : > { %2021 = vmatpush2.bf16.msra.mxu1 %v3751_v39  ;;  %2066 = vmatpush1.bf16.msra.mxu0 %v3754_v40  ;;  %v3817_v39 = vld [vmem:[#allocation8 + $0x230] ss:$8 sps:$4 sm:$0xff]   ;;  %v3828_v40 = vld [vmem:[#allocation8 + $0x364] ss:$8 sps:$4 sm:$0xff]  }
 0x262   : > { %2022 = vmatprep.subr.bf16.mxu1 %v3759_v41  ;;  %2067 = vmatprep.subr.bf16.mxu0 %v3762_v42  ;;  %v3825_v41 = vld [vmem:[#allocation8 + $0x224] ss:$8 sps:$4 sm:$0xff]   ;;  %v3826_v42 = vld [vmem:[#allocation8 + $0x360] ss:$8 sps:$4 sm:$0xff]  }
 0x265   : > { %2023 = vmatpush2.bf16.msra.mxu1 %v3757_v43  ;;  %2068 = vmatpush1.bf16.msra.mxu0 %v3760_v45  ;;  %v3834_v43 = vld [vmem:[#allocation8 + $0x354] ss:$8 sps:$4 sm:$0xff]  }
 0x266   : > { %2024 = vmatprep.subr.bf16.mxu1 %v3765_v46  ;;  %2069 = vmatprep.subr.bf16.mxu0 %v3768_v48  ;;  %v3831_v45 = vld [vmem:[#allocation8 + $0x214] ss:$8 sps:$4 sm:$0xff]   ;;  %v3832_v46 = vld [vmem:[#allocation8 + $0x350] ss:$8 sps:$4 sm:$0xff]  }
 0x267   : > { %v3829_v48 = vld [vmem:[#allocation8 + $0x210] ss:$8 sps:$4 sm:$0xff]  }
 0x269   : > { %2025 = vmatpush2.bf16.msra.mxu1 %v3763_v50  ;;  %2070 = vmatpush1.bf16.msra.mxu0 %v3766_v51  ;;  %v3840_v50 = vld [vmem:[#allocation8 + $0x344] ss:$8 sps:$4 sm:$0xff]  }
 0x26a   : > { %2026 = vmatprep.subr.bf16.mxu1 %v3771_v53  ;;  %2071 = vmatprep.subr.bf16.mxu0 %v3774_v54  ;;  %v3837_v51 = vld [vmem:[#allocation8 + $0x204] ss:$8 sps:$4 sm:$0xff]   ;;  %v3838_v53 = vld [vmem:[#allocation8 + $0x340] ss:$8 sps:$4 sm:$0xff]  }
 0x26b   : > { %v3835_v54 = vld [vmem:[#allocation8 + $0x200] ss:$8 sps:$4 sm:$0xff]  }
 0x26d   : > { %2027 = vmatpush2.bf16.msra.mxu1 %v3769_v55  ;;  %2072 = vmatpush2.bf16.msra.mxu0 %v3772_v56  ;;  %v3846_v55 = vld [vmem:[#allocation8 + $0x334] ss:$8 sps:$4 sm:$0xff]  }
 0x26e   : > { %2028 = vmatprep.subr.bf16.mxu1 %v3777_v57  ;;  %2073 = vmatprep.subr.bf16.mxu0 %v3780_v58  ;;  %v3843_v56 = vld [vmem:[#allocation8 + $0x2f4] ss:$8 sps:$4 sm:$0xff]   ;;  %v3844_v57 = vld [vmem:[#allocation8 + $0x330] ss:$8 sps:$4 sm:$0xff]  }
 0x26f   : > { %v3841_v58 = vld [vmem:[#allocation8 + $0x2f0] ss:$8 sps:$4 sm:$0xff]  }
 0x271   : > { %2029 = vmatpush2.bf16.msra.mxu1 %v3775_v59  ;;  %2074 = vmatpush2.bf16.msra.mxu0 %v3778_v60  ;;  %v3852_v59 = vld [vmem:[#allocation8 + $0x324] ss:$8 sps:$4 sm:$0xff]  }
 0x272   : > { %2030 = vmatprep.subr.bf16.mxu1 %v3783_v61  ;;  %2075 = vmatprep.subr.bf16.mxu0 %v3786_v62  ;;  %v3849_v60 = vld [vmem:[#allocation8 + $0x2e4] ss:$8 sps:$4 sm:$0xff]   ;;  %v3850_v61 = vld [vmem:[#allocation8 + $0x320] ss:$8 sps:$4 sm:$0xff]  }
 0x273   : > { %v3847_v62 = vld [vmem:[#allocation8 + $0x2e0] ss:$8 sps:$4 sm:$0xff]  }
 0x275   : > { %2031 = vmatpush2.bf16.msra.mxu1 %v3781_v63  ;;  %2076 = vmatpush2.bf16.msra.mxu0 %v3784_v3  ;;  %v3855_v63 = vld [vmem:[#allocation8 + $0x2d4] ss:$8 sps:$4 sm:$0xff]   ;;  %v3856_v3 = vld [vmem:[#allocation8 + $0x310] ss:$8 sps:$4 sm:$0xff]  }
 0x276   : > { %2032 = vmatprep.subr.bf16.mxu1 %v3789_v5  ;;  %2077 = vmatprep.subr.bf16.mxu0 %v3792_v6  ;;  %v3853_v5 = vld [vmem:[#allocation8 + $0x2d0] ss:$8 sps:$4 sm:$0xff]   ;;  %v3864_v6 = vld [vmem:[#allocation8 + $0x304] ss:$8 sps:$4 sm:$0xff]  }
 0x279   : > { %2033 = vmatpush2.bf16.msra.mxu1 %v3787_v7  ;;  %2078 = vmatpush2.bf16.msra.mxu0 %v3790_v9  ;;  %v3861_v7 = vld [vmem:[#allocation8 + $0x2c4] ss:$8 sps:$4 sm:$0xff]   ;;  %v3862_v9 = vld [vmem:[#allocation8 + $0x300] ss:$8 sps:$4 sm:$0xff]  }
 0x27a   : > { %2079 = vmatprep.subr.bf16.mxu0 %v3795_v10  ;;  %2108 = vmatprep.subr.bf16.mxu1 %v3798_v11  ;;  %v3859_v10 = vld [vmem:[#allocation8 + $0x2c0] ss:$8 sps:$4 sm:$0xff]   ;;  %v3870_v11 = vld [vmem:[#allocation8 + $0x3f4] ss:$8 sps:$4 sm:$0xff]  }
 0x27c   : > { %2035 = vmatmul.mubr.bf16.vlgmr.msra.gmra.mxu1 %v4551_v28 }
 0x27d   : > { %2044 = vmatprep.mubr.bf16.mxu1 %v4533_v16  ;;  %2080 = vmatpush2.bf16.msra.mxu0 %v3793_v12  ;;  %v3867_v12 = vld [vmem:[#allocation8 + $0x2b4] ss:$8 sps:$4 sm:$0xff]  }
 0x27e   : > { %2109 = vmatpush1.bf16.msra.mxu1 %v3796_v13  ;;  %2081 = vmatprep.subr.bf16.mxu0 %v3801_v14  ;;  %v3868_v13 = vld [vmem:[#allocation8 + $0x3f0] ss:$8 sps:$4 sm:$0xff]  }
 0x27f   : > { %2110 = vmatprep.subr.bf16.mxu1 %v3804_v15  ;;  %v3865_v14 = vld [vmem:[#allocation8 + $0x2b0] ss:$8 sps:$4 sm:$0xff]   ;;  %v3876_v15 = vld [vmem:[#allocation8 + $0x3e4] ss:$8 sps:$4 sm:$0xff]  }
 0x281   : > { %2082 = vmatpush2.bf16.msra.mxu0 %v3799_v18  ;;  %v3873_v18 = vld [vmem:[#allocation8 + $0x2a4] ss:$8 sps:$4 sm:$0xff]  }
 0x282   : > { %2111 = vmatpush1.bf16.msra.mxu1 %v3802_v19  ;;  %2083 = vmatprep.subr.bf16.mxu0 %v3807_v21  ;;  %v3874_v19 = vld [vmem:[#allocation8 + $0x3e0] ss:$8 sps:$4 sm:$0xff]  }
 0x283   : > { %2112 = vmatprep.subr.bf16.mxu1 %v3810_v22  ;;  %v3871_v21 = vld [vmem:[#allocation8 + $0x2a0] ss:$8 sps:$4 sm:$0xff]   ;;  %v3882_v22 = vld [vmem:[#allocation8 + $0x3d4] ss:$8 sps:$4 sm:$0xff]  }
 0x284   : > { %2045 = vmatmul.mubr.bf16.gmra.mxu1 %v4535_v17 }
 0x285   : > { %2084 = vmatpush2.bf16.msra.mxu0 %v3805_v23  ;;  %2140 = vmatprep.mubr.bf16.mxu1 %v4589_v49  ;;  %v3823_v49 = vld [vmem:[#allocation8 + $0x220] ss:$8 sps:$4 sm:$0xff]   ;;  %v3879_v23 = vld [vmem:[#allocation8 + $0x294] ss:$8 sps:$4 sm:$0xff]  }
 0x286   : > { %2113 = vmatpush1.bf16.msra.mxu1 %v3808_v24  ;;  %2085 = vmatprep.subr.bf16.mxu0 %v3813_v26  ;;  %v3880_v24 = vld [vmem:[#allocation8 + $0x3d0] ss:$8 sps:$4 sm:$0xff]  }
 0x287   : > { %2114 = vmatprep.subr.bf16.mxu1 %v3816_v27  ;;  %v3877_v26 = vld [vmem:[#allocation8 + $0x290] ss:$8 sps:$4 sm:$0xff]   ;;  %v3888_v27 = vld [vmem:[#allocation8 + $0x3c4] ss:$8 sps:$4 sm:$0xff]  }
 0x289   : > { %2086 = vmatpush2.bf16.msra.mxu0 %v3811_v29  ;;  %v3885_v29 = vld [vmem:[#allocation8 + $0x284] ss:$8 sps:$4 sm:$0xff]  }
 0x28a   : > { %2115 = vmatpush1.bf16.msra.mxu1 %v3814_v30  ;;  %2161 = vmatprep.subr.bf16.mxu0 %v3822_v35  ;;  %v3886_v30 = vld [vmem:[#allocation8 + $0x3c0] ss:$8 sps:$4 sm:$0xff]  }
 0x28b   : > { %2116 = vmatprep.subr.bf16.mxu1 %v3819_v36  ;;  %v3883_v35 = vld [vmem:[#allocation8 + $0x280] ss:$8 sps:$4 sm:$0xff]   ;;  %v3891_v36 = vld [vmem:[#allocation8 + $0x3b4] ss:$8 sps:$4 sm:$0xff]  }
 0x28c   : > { %2088 = vmatmul.mubr.bf16.vlgmr.msra.gmra.mxu0 %v4573_v37 }
 0x28d   : > { %2162 = vmatpush1.bf16.msra.mxu0 %v3820_v38  ;;  %2097 = vmatprep.mubr.bf16.mxu0 %v4547_v25  ;;  %v3903_v38 = vld [vmem:[#allocation8 + $0x474] ss:$8 sps:$4 sm:$0xff]  }
 0x28e   : > { %2117 = vmatpush1.bf16.msra.mxu1 %v3817_v39  ;;  %2163 = vmatprep.subr.bf16.mxu0 %v3828_v40  ;;  %v3889_v39 = vld [vmem:[#allocation8 + $0x3b0] ss:$8 sps:$4 sm:$0xff]   ;;  %v3894_v40 = vld [vmem:[#allocation8 + $0x3a4] ss:$8 sps:$4 sm:$0xff]  }
 0x28f   : > { %2118 = vmatprep.subr.bf16.mxu1 %v3825_v41  ;;  %v3901_v41 = vld [vmem:[#allocation8 + $0x470] ss:$8 sps:$4 sm:$0xff]  }
 0x291   : > { %2164 = vmatpush1.bf16.msra.mxu0 %v3826_v42  ;;  %v3906_v42 = vld [vmem:[#allocation8 + $0x464] ss:$8 sps:$4 sm:$0xff]  }
 0x292   : > { %2119 = vmatpush1.bf16.msra.mxu1 %v3823_v49  ;;  %2165 = vmatprep.subr.bf16.mxu0 %v3834_v43  ;;  %v3892_v49 = vld [vmem:[#allocation8 + $0x3a0] ss:$8 sps:$4 sm:$0xff]   ;;  %v3897_v43 = vld [vmem:[#allocation8 + $0x394] ss:$8 sps:$4 sm:$0xff]  }
 0x293   : > { %2120 = vmatprep.subr.bf16.mxu1 %v3831_v45  ;;  %v3904_v45 = vld [vmem:[#allocation8 + $0x460] ss:$8 sps:$4 sm:$0xff]  }
 0x294   : > { %2098 = vmatmul.mubr.bf16.gmra.mxu0 %v4561_v33 }
 0x295   : > { %2166 = vmatpush1.bf16.msra.mxu0 %v3832_v46  ;;  %2193 = vmatprep.mubr.bf16.mxu0 %v4604_v4  ;;  %v3858_v4 = vld [vmem:[#allocation8 + $0x314] ss:$8 sps:$4 sm:$0xff]  }
 0x296   : > { %2121 = vmatpush1.bf16.msra.mxu1 %v3829_v48  ;;  %2167 = vmatprep.subr.bf16.mxu0 %v3840_v50  ;;  %v3909_v46 = vld [vmem:[#allocation8 + $0x454] ss:$8 sps:$4 sm:$0xff]   ;;  %v3895_v48 = vld [vmem:[#allocation8 + $0x390] ss:$8 sps:$4 sm:$0xff]   ;;  %v3900_v50 = vld [vmem:[#allocation8 + $0x384] ss:$8 sps:$4 sm:$0xff]  }
 0x297   : > { %2122 = vmatprep.subr.bf16.mxu1 %v3837_v51  ;;  %v3907_v51 = vld [vmem:[#allocation8 + $0x450] ss:$8 sps:$4 sm:$0xff]  }
 0x299   : > { %2168 = vmatpush1.bf16.msra.mxu0 %v3838_v53  ;;  %v3912_v53 = vld [vmem:[#allocation8 + $0x444] ss:$8 sps:$4 sm:$0xff]  }
 0x29a   : > { %2123 = vmatpush1.bf16.msra.mxu1 %v3835_v54  ;;  %2169 = vmatprep.subr.bf16.mxu0 %v3846_v55  ;;  %v3910_v54 = vld [vmem:[#allocation8 + $0x440] ss:$8 sps:$4 sm:$0xff]   ;;  %v3915_v55 = vld [vmem:[#allocation8 + $0x434] ss:$8 sps:$4 sm:$0xff]  }
 0x29b   : > { %2124 = vmatprep.subr.bf16.mxu1 %v3843_v56  ;;  %v3916_v56 = vld [vmem:[#allocation8 + $0x570] ss:$8 sps:$4 sm:$0xff]  }
 0x29d   : > { %2170 = vmatpush1.bf16.msra.mxu0 %v3844_v57  ;;  %v3924_v57 = vld [vmem:[#allocation8 + $0x564] ss:$8 sps:$4 sm:$0xff]  }
 0x29e   : > { %2125 = vmatpush2.bf16.msra.mxu1 %v3841_v58  ;;  %2171 = vmatprep.subr.bf16.mxu0 %v3852_v59  ;;  %v3913_v58 = vld [vmem:[#allocation8 + $0x430] ss:$8 sps:$4 sm:$0xff]   ;;  %v3921_v59 = vld [vmem:[#allocation8 + $0x424] ss:$8 sps:$4 sm:$0xff]  }
 0x29f   : > { %2126 = vmatprep.subr.bf16.mxu1 %v3849_v60  ;;  %v3930_v60 = vld [vmem:[#allocation8 + $0x554] ss:$8 sps:$4 sm:$0xff]  }
 0x2a1   : > { %2172 = vmatpush1.bf16.msra.mxu0 %v3850_v61  ;;  %v3919_v61 = vld [vmem:[#allocation8 + $0x420] ss:$8 sps:$4 sm:$0xff]  }
 0x2a2   : > { %2127 = vmatpush2.bf16.msra.mxu1 %v3847_v62  ;;  %2173 = vmatprep.subr.bf16.mxu0 %v3858_v4  ;;  %v3927_v62 = vld [vmem:[#allocation8 + $0x414] ss:$8 sps:$4 sm:$0xff]   ;;  %v3928_v4 = vld [vmem:[#allocation8 + $0x550] ss:$8 sps:$4 sm:$0xff]  }
 0x2a3   : > { %2128 = vmatprep.subr.bf16.mxu1 %v3855_v63  ;;  %v3936_v63 = vld [vmem:[#allocation8 + $0x544] ss:$8 sps:$4 sm:$0xff]  }
 0x2a5   : > { %2174 = vmatpush1.bf16.msra.mxu0 %v3856_v3  ;;  %v3925_v3 = vld [vmem:[#allocation8 + $0x410] ss:$8 sps:$4 sm:$0xff]  }
 0x2a6   : > { %2129 = vmatpush2.bf16.msra.mxu1 %v3853_v5  ;;  %2175 = vmatprep.subr.bf16.mxu0 %v3864_v6  ;;  %v3942_v5 = vld [vmem:[#allocation8 + $0x534] ss:$8 sps:$4 sm:$0xff]   ;;  %v3931_v6 = vld [vmem:[#allocation8 + $0x400] ss:$8 sps:$4 sm:$0xff]  }
 0x2a7   : > { %2130 = vmatprep.subr.bf16.mxu1 %v3861_v7  ;;  %v3939_v7 = vld [vmem:[#allocation8 + $0x4f4] ss:$8 sps:$4 sm:$0xff]  }
 0x2a9   : > { %2176 = vmatpush1.bf16.msra.mxu0 %v3862_v9  ;;  %v3940_v9 = vld [vmem:[#allocation8 + $0x530] ss:$8 sps:$4 sm:$0xff]  }
 0x2aa   : > { %2131 = vmatpush2.bf16.msra.mxu1 %v3859_v10  ;;  %2177 = vmatprep.subr.bf16.mxu0 %v3870_v11  ;;  %v3948_v10 = vld [vmem:[#allocation8 + $0x524] ss:$8 sps:$4 sm:$0xff]   ;;  %v3937_v11 = vld [vmem:[#allocation8 + $0x4f0] ss:$8 sps:$4 sm:$0xff]  }
 0x2ab   : > { %2132 = vmatprep.subr.bf16.mxu1 %v3867_v12  ;;  %v3945_v12 = vld [vmem:[#allocation8 + $0x4e4] ss:$8 sps:$4 sm:$0xff]  }
 0x2ad   : > { %2178 = vmatpush2.bf16.msra.mxu0 %v3868_v13  ;;  %v3954_v13 = vld [vmem:[#allocation8 + $0x514] ss:$8 sps:$4 sm:$0xff]  }
 0x2ae   : > { %2133 = vmatpush2.bf16.msra.mxu1 %v3865_v14  ;;  %2179 = vmatprep.subr.bf16.mxu0 %v3876_v15  ;;  %v3943_v14 = vld [vmem:[#allocation8 + $0x4e0] ss:$8 sps:$4 sm:$0xff]   ;;  %v3951_v15 = vld [vmem:[#allocation8 + $0x4d4] ss:$8 sps:$4 sm:$0xff]  }
 0x2af   : > { %2134 = vmatprep.subr.bf16.mxu1 %v3873_v18  ;;  %v3952_v18 = vld [vmem:[#allocation8 + $0x510] ss:$8 sps:$4 sm:$0xff]  }
 0x2b1   : > { %2180 = vmatpush2.bf16.msra.mxu0 %v3874_v19  ;;  %v3960_v19 = vld [vmem:[#allocation8 + $0x504] ss:$8 sps:$4 sm:$0xff]  }
 0x2b2   : > { %2135 = vmatpush2.bf16.msra.mxu1 %v3871_v21  ;;  %2181 = vmatprep.subr.bf16.mxu0 %v3882_v22  ;;  %v3949_v21 = vld [vmem:[#allocation8 + $0x4d0] ss:$8 sps:$4 sm:$0xff]   ;;  %v3957_v22 = vld [vmem:[#allocation8 + $0x4c4] ss:$8 sps:$4 sm:$0xff]  }
 0x2b3   : > { %2136 = vmatprep.subr.bf16.mxu1 %v3879_v23  ;;  %v3958_v23 = vld [vmem:[#allocation8 + $0x500] ss:$8 sps:$4 sm:$0xff]  }
 0x2b5   : > { %2182 = vmatpush2.bf16.msra.mxu0 %v3880_v24  ;;  %v3966_v24 = vld [vmem:[#allocation8 + $0x5f4] ss:$8 sps:$4 sm:$0xff]  }
 0x2b6   : > { %2137 = vmatpush2.bf16.msra.mxu1 %v3877_v26  ;;  %2183 = vmatprep.subr.bf16.mxu0 %v3888_v27  ;;  %v3955_v26 = vld [vmem:[#allocation8 + $0x4c0] ss:$8 sps:$4 sm:$0xff]   ;;  %v3963_v27 = vld [vmem:[#allocation8 + $0x4b4] ss:$8 sps:$4 sm:$0xff]  }
 0x2b7   : > { %2138 = vmatprep.subr.bf16.mxu1 %v3885_v29  ;;  %v3964_v29 = vld [vmem:[#allocation8 + $0x5f0] ss:$8 sps:$4 sm:$0xff]  }
 0x2b9   : > { %2184 = vmatpush2.bf16.msra.mxu0 %v3886_v30  ;;  %v3972_v30 = vld [vmem:[#allocation8 + $0x5e4] ss:$8 sps:$4 sm:$0xff]  }
 0x2ba   : > { %2139 = vmatpush2.bf16.msra.mxu1 %v3883_v35  ;;  %2185 = vmatprep.subr.bf16.mxu0 %v3891_v36  ;;  %v3961_v35 = vld [vmem:[#allocation8 + $0x4b0] ss:$8 sps:$4 sm:$0xff]   ;;  %v3969_v36 = vld [vmem:[#allocation8 + $0x4a4] ss:$8 sps:$4 sm:$0xff]  }
 0x2bb   : > { %2214 = vmatprep.subr.bf16.mxu1 %v3903_v38  ;;  %v3970_v38 = vld [vmem:[#allocation8 + $0x5e0] ss:$8 sps:$4 sm:$0xff]  }
 0x2bd   : > { %2141 = vmatmul.mubr.bf16.vlgmr.msra.gmra.mxu1 %v4594_v52  ;;  %2186 = vmatpush2.bf16.msra.mxu0 %v3889_v39  ;;  %v3898_v52 = vld [vmem:[#allocation8 + $0x380] ss:$8 sps:$4 sm:$0xff]   ;;  %v3978_v39 = vld [vmem:[#allocation8 + $0x5d4] ss:$8 sps:$4 sm:$0xff]  }
 0x2be   : > { %2150 = vmatprep.mubr.bf16.mxu1 %v4587_v47  ;;  %2187 = vmatprep.subr.bf16.mxu0 %v3894_v40  ;;  %v3918_v47 = vld [vmem:[#allocation8 + $0x574] ss:$8 sps:$4 sm:$0xff]   ;;  %v3967_v40 = vld [vmem:[#allocation8 + $0x4a0] ss:$8 sps:$4 sm:$0xff]  }
 0x2bf   : > { %2215 = vmatpush1.bf16.msra.mxu1 %v3901_v41  ;;  %v3975_v41 = vld [vmem:[#allocation8 + $0x494] ss:$8 sps:$4 sm:$0xff]  }
 0x2c0   : > { %2216 = vmatprep.subr.bf16.mxu1 %v3906_v42  ;;  %v3976_v42 = vld [vmem:[#allocation8 + $0x5d0] ss:$8 sps:$4 sm:$0xff]  }
 0x2c1   : > { %2188 = vmatpush2.bf16.msra.mxu0 %v3892_v49  ;;  %v3984_v49 = vld [vmem:[#allocation8 + $0x5c4] ss:$8 sps:$4 sm:$0xff]  }
 0x2c2   : > { %2189 = vmatprep.subr.bf16.mxu0 %v3897_v43  ;;  %v3973_v43 = vld [vmem:[#allocation8 + $0x490] ss:$8 sps:$4 sm:$0xff]  }
 0x2c3   : > { %2217 = vmatpush1.bf16.msra.mxu1 %v3904_v45  ;;  %v3981_v45 = vld [vmem:[#allocation8 + $0x484] ss:$8 sps:$4 sm:$0xff]  }
 0x2c4   : > { %2218 = vmatprep.subr.bf16.mxu1 %v3909_v46  ;;  %v3982_v46 = vld [vmem:[#allocation8 + $0x5c0] ss:$8 sps:$4 sm:$0xff]  }
 0x2c5   : > { %2151 = vmatmul.mubr.bf16.gmra.mxu1 %v4585_v44  ;;  %2190 = vmatpush2.bf16.msra.mxu0 %v3895_v48  ;;  %v3922_v44 = vld [vmem:[#allocation8 + $0x560] ss:$8 sps:$4 sm:$0xff]   ;;  %v3987_v48 = vld [vmem:[#allocation8 + $0x5b4] ss:$8 sps:$4 sm:$0xff]  }
 0x2c6   : > { %2191 = vmatprep.subr.bf16.mxu0 %v3900_v50  ;;  %v3979_v50 = vld [vmem:[#allocation8 + $0x480] ss:$8 sps:$4 sm:$0xff]  }
 0x2c7   : > { %2219 = vmatpush1.bf16.msra.mxu1 %v3907_v51  ;;  %v3985_v51 = vld [vmem:[#allocation8 + $0x5b0] ss:$8 sps:$4 sm:$0xff]  }
 0x2c8   : > { %2220 = vmatprep.subr.bf16.mxu1 %v3912_v53  ;;  %v3990_v53 = vld [vmem:[#allocation8 + $0x5a4] ss:$8 sps:$4 sm:$0xff]  }
 0x2c9   : > { %2192 = vmatpush2.bf16.msra.mxu0 %v3898_v52 }
 0x2ca   : > { %2267 = vmatprep.subr.bf16.mxu0 %v3918_v47  ;;  %v3988_v47 = vld [vmem:[#allocation8 + $0x5a0] ss:$8 sps:$4 sm:$0xff]  }
 0x2cb   : > { %2221 = vmatpush1.bf16.msra.mxu1 %v3910_v54 }
 0x2cc   : > { %2194 = vmatmul.mubr.bf16.vlgmr.msra.gmra.mxu0 %v4612_v8  ;;  %2222 = vmatprep.subr.bf16.mxu1 %v3915_v55  ;;  %v3933_v8 = vld [vmem:[#allocation8 + $0x404] ss:$8 sps:$4 sm:$0xff]   ;;  %v3993_v55 = vld [vmem:[#allocation8 + $0x594] ss:$8 sps:$4 sm:$0xff]  }
 0x2cd   : > { %2203 = vmatprep.mubr.bf16.mxu0 %v4600_v1  ;;  %2268 = vmatpush1.bf16.msra.mxu0 %v3916_v56  ;;  %v3934_v1 = vld [vmem:[#allocation8 + $0x540] ss:$8 sps:$4 sm:$0xff]  }
 0x2ce   : > { %2269 = vmatprep.subr.bf16.mxu0 %v3924_v57 }
 0x2cf   : > { %2223 = vmatpush1.bf16.msra.mxu1 %v3913_v58 }
 0x2d0   : > { %2224 = vmatprep.subr.bf16.mxu1 %v3921_v59  ;;  %v3991_v59 = vld [vmem:[#allocation8 + $0x590] ss:$8 sps:$4 sm:$0xff]  }
 0x2d1   : > { %2270 = vmatpush1.bf16.msra.mxu0 %v3922_v44 }
 0x2d2   : > { %2271 = vmatprep.subr.bf16.mxu0 %v3930_v60  ;;  %v1006_v60 = vunpack.c.h.bf16 %v4551_v28 }
 0x2d3   : > { %2225 = vmatpush1.bf16.msra.mxu1 %v3919_v61 }
 0x2d4   : > { %2204 = vmatmul.mubr.bf16.gmra.mxu0 %v4602_v2  ;;  %2226 = vmatprep.subr.bf16.mxu1 %v3927_v62  ;;  %v3946_v2 = vld [vmem:[#allocation8 + $0x520] ss:$8 sps:$4 sm:$0xff]   ;;  %v3996_v62 = vld [vmem:[#allocation8 + $0x584] ss:$8 sps:$4 sm:$0xff]  }
 0x2d5   : > { %2272 = vmatpush1.bf16.msra.mxu0 %v3928_v4  ;;  %v1003_v4 = vunpack.c.l.bf16 %v4539_v20 }
 0x2d6   : > { %2273 = vmatprep.subr.bf16.mxu0 %v3936_v63 }
 0x2d7   : > { %2227 = vmatpush1.bf16.msra.mxu1 %v3925_v3  ;;  %v1007_v3 = vunpack.c.h.bf16 %v4539_v20  ;;  %v1014_v20 = vunpack.c.h.bf16 %v4535_v17 }
 0x2d8   : > { %2228 = vmatprep.subr.bf16.mxu1 %v3933_v8  ;;  %v1002_v8 = vunpack.c.l.bf16 %v4551_v28 }
 0x2d9   : > { %2274 = vmatpush1.bf16.msra.mxu0 %v3934_v1 }
 0x2da   : > { %2275 = vmatprep.subr.bf16.mxu0 %v3942_v5 }
 0x2db   : > { %2229 = vmatpush1.bf16.msra.mxu1 %v3931_v6 }
 0x2dc   : > { %2230 = vmatprep.subr.bf16.mxu1 %v3939_v7 }
 0x2dd   : > { %2276 = vmatpush1.bf16.msra.mxu0 %v3940_v9  ;;  %v3994_v9 = vld [vmem:[#allocation8 + $0x580] ss:$8 sps:$4 sm:$0xff]  }
 0x2de   : > { %2277 = vmatprep.subr.bf16.mxu0 %v3948_v10 }
 0x2df   : > { %2231 = vmatpush2.bf16.msra.mxu1 %v3937_v11 }
 0x2e0   : > { %2232 = vmatprep.subr.bf16.mxu1 %v3945_v12 }
 0x2e1   : > { %2278 = vmatpush1.bf16.msra.mxu0 %v3946_v2 }
 0x2e2   : > { %2279 = vmatprep.subr.bf16.mxu0 %v3954_v13 }
 0x2e3   : > { %2233 = vmatpush2.bf16.msra.mxu1 %v3943_v14 }
 0x2e4   : > { %2234 = vmatprep.subr.bf16.mxu1 %v3951_v15 }
 0x2e5   : > { %2280 = vmatpush1.bf16.msra.mxu0 %v3952_v18 }
 0x2e6   : > { %2281 = vmatprep.subr.bf16.mxu0 %v3960_v19  ;;  %v1011_v19 = vunpack.c.l.bf16 %v4533_v16 }
 0x2e7   : > { %2235 = vmatpush2.bf16.msra.mxu1 %v3949_v21 }
 0x2e8   : > { %2236 = vmatprep.subr.bf16.mxu1 %v3957_v22  ;;  %v1015_v22 = vunpack.c.h.bf16 %v4533_v16  ;;  %v1009_v16 = vunpack.c.h.bf16 %v4564_v34 }
 0x2e9   : > { %2282 = vmatpush1.bf16.msra.mxu0 %v3958_v23  ;;  %v1010_v23 = vunpack.c.l.bf16 %v4535_v17  ;;  %v1004_v17 = vunpack.c.l.bf16 %v4573_v37 }
 0x2ea   : > { %2283 = vmatprep.subr.bf16.mxu0 %v3966_v24 }
 0x2eb   : > { %2237 = vmatpush2.bf16.msra.mxu1 %v3955_v26 }
 0x2ec   : > { %2238 = vmatprep.subr.bf16.mxu1 %v3963_v27 }
 0x2ed   : > { %2284 = vmatpush2.bf16.msra.mxu0 %v3964_v29 }
 0x2ee   : > { %2285 = vmatprep.subr.bf16.mxu0 %v3972_v30 }
 0x2ef   : > { %2239 = vmatpush2.bf16.msra.mxu1 %v3961_v35 }
 0x2f0   : > { %2240 = vmatprep.subr.bf16.mxu1 %v3969_v36 }
 0x2f1   : > { %2286 = vmatpush2.bf16.msra.mxu0 %v3970_v38 }
 0x2f2   : > { %2287 = vmatprep.subr.bf16.mxu0 %v3978_v39  ;;  %v1008_v39 = vunpack.c.h.bf16 %v4573_v37 }
 0x2f3   : > { %2241 = vmatpush2.bf16.msra.mxu1 %v3967_v40 }
 0x2f4   : > { %2242 = vmatprep.subr.bf16.mxu1 %v3975_v41 }
 0x2f5   : > { %2288 = vmatpush2.bf16.msra.mxu0 %v3976_v42  ;;  %v1005_v42 = vunpack.c.l.bf16 %v4564_v34 }
 0x2f6   : > { %2289 = vmatprep.subr.bf16.mxu0 %v3984_v49 }
 0x2f7   : > { %2243 = vmatpush2.bf16.msra.mxu1 %v3973_v43 }
 0x2f8   : > { %2244 = vmatprep.subr.bf16.mxu1 %v3981_v45 }
 0x2f9   : > { %2290 = vmatpush2.bf16.msra.mxu0 %v3982_v46 }
 0x2fa   : > { %2291 = vmatprep.subr.bf16.mxu0 %v3987_v48 }
 0x2fb   : > { %2245 = vmatpush2.bf16.msra.mxu1 %v3979_v50 }
 0x2fc   : > { %v914_v52 = vpop.f32.mrf.mxu1 }
 0x2fd   : > { %2292 = vmatpush2.bf16.msra.mxu0 %v3985_v51  ;;  %v986_v44 = vmul.f32 2.0, %v914_v52 }
 0x2fe   : > { %v916_v54 = vpop.f32.mrf.mxu1  ;;  %2293 = vmatprep.subr.bf16.mxu0 %v3990_v53 }
 0x2ff   : > { %v987_v57 = vmul.f32 2.0, %v916_v54  ;;  %v1018_v10 = vsub.f32 %v986_v44, %v1002_v8 }
 0x300   : > { %v918_v56 = vpop.f32.mrf.mxu1 }
 0x301   : > { %v990_v58 = vmul.f32 2.0, %v918_v56  ;;  %2294 = vmatpush2.bf16.msra.mxu0 %v3988_v47  ;;  %v1019_v6 = vsub.f32 %v987_v57, %v1003_v4  ;;  %v1016_v57 = vunpack.c.h.bf16 %v4561_v33 }
 0x302   : > { %v920_v61 = vpop.f32.mrf.mxu1  ;;  %2295 = vmatprep.subr.bf16.mxu0 %v3993_v55 }
 0x303   : > { %v991_v63 = vmul.f32 2.0, %v920_v61  ;;  %v1022_v1 = vsub.f32 %v990_v58, %v1006_v60  ;;  %v1013_v58 = vunpack.c.l.bf16 %v4547_v25  ;;  %v1012_v60 = vunpack.c.l.bf16 %v4561_v33 }
 0x304   : > { %v924_v5 = vpop.f32.mrf.mxu1 }
 0x305   : > { %v1023_v7 = vsub.f32 %v991_v63, %v1007_v3  ;;  %2296 = vmatpush2.bf16.msra.mxu0 %v3991_v59  ;;  %v1034_v2 = vpack.c.bf16 %v1022_v1, %v1018_v10  ;;  %v994_v18 = vmul.f32 2.0, %v924_v5  ;;  %v1017_v59 = vunpack.c.h.bf16 %v4547_v25 }
 0x306   : > { %v926_v11 = vpop.f32.mrf.mxu1  ;;  %2297 = vmatprep.subr.bf16.mxu0 %v3996_v62 }
 0x307   : > { %v1035_v12 = vpack.c.bf16 %v1023_v7, %v1019_v6  ;;  %v995_v14 = vmul.f32 2.0, %v926_v11  ;;  %v1026_v30 = vsub.f32 %v994_v18, %v1010_v23 }
 0x308   : > { %v928_v13 = vpop.f32.mrf.mxu1 }
 0x309   : > { %v998_v15 = vmul.f32 2.0, %v928_v13  ;;  %2246 = vmatprep.mubr.bf16.mxu1 %v1035_v12  ;;  %2298 = vmatpush2.bf16.msra.mxu0 %v3994_v9  ;;  %v1027_v27 = vsub.f32 %v995_v14, %v1011_v19 }
 0x30a   : > { %v930_v28 = vpop.f32.mrf.mxu1  ;;  %2247 = vmatmul.mubr.bf16.vlgmr.msra.gmra.mxu1 %v1034_v2 }
 0x30b   : > { %v999_v21 = vmul.f32 2.0, %v930_v28  ;;  %v1030_v24 = vsub.f32 %v998_v15, %v1014_v20 }
 0x30c   : > { %v967_v26 = vpop.f32.mrf.mxu0 }
 0x30d   : > { %v1031_v29 = vsub.f32 %v999_v21, %v1015_v22  ;;  %v1038_v40 = vpack.c.bf16 %v1030_v24, %v1026_v30  ;;  %v988_v43 = vmul.f32 2.0, %v967_v26 }
 0x30e   : > { %v969_v35 = vpop.f32.mrf.mxu0 }
 0x30f   : > { %v1039_v36 = vpack.c.bf16 %v1031_v29, %v1027_v27  ;;  %v989_v41 = vmul.f32 2.0, %v969_v35  ;;  %v1020_v52 = vsub.f32 %v988_v43, %v1004_v17 }
 0x310   : > { %v971_v38 = vpop.f32.mrf.mxu0 }
 0x311   : > { %v992_v49 = vmul.f32 2.0, %v971_v38  ;;  %2256 = vmatprep.mubr.bf16.mxu1 %v1039_v36  ;;  %v1021_v51 = vsub.f32 %v989_v41, %v1005_v42 }
 0x312   : > { %v973_v45 = vpop.f32.mrf.mxu0  ;;  %2257 = vmatmul.mubr.bf16.gmra.mxu1 %v1038_v40 }
 0x313   : > { %v993_v46 = vmul.f32 2.0, %v973_v45  ;;  %2500 = vmatprep.mubr.bf16.mxu1 %v4264_v0  ;;  %v1024_v48 = vsub.f32 %v992_v49, %v1008_v39 }
 0x314   : > { %v977_v50 = vpop.f32.mrf.mxu0 }
 0x315   : > { %v1025_v53 = vsub.f32 %v993_v46, %v1009_v16  ;;  %v1036_v55 = vpack.c.bf16 %v1024_v48, %v1020_v52  ;;  %v996_v44 = vmul.f32 2.0, %v977_v50  ;;  %v2321_v48 = vlaneseq }
 0x316   : > { %v979_v47 = vpop.f32.mrf.mxu0 }
 0x317   : > { %v1037_v54 = vpack.c.bf16 %v1025_v53, %v1021_v51  ;;  %v997_v34 = vmul.f32 2.0, %v979_v47  ;;  %v1028_v8 = vsub.f32 %v996_v44, %v1012_v60  ;;  %v2322_v47 = vshrl.u32 %v2321_v48, 7 }
 0x318   : > { %v981_v56 = vpop.f32.mrf.mxu0 }
 0x319   : > { %v1000_v37 = vmul.f32 2.0, %v981_v56  ;;  %2299 = vmatprep.mubr.bf16.mxu0 %v1037_v54  ;;  %v1029_v63 = vsub.f32 %v997_v34, %v1013_v58 }
 0x31a   : > { %v983_v61 = vpop.f32.mrf.mxu0  ;;  %2300 = vmatmul.mubr.bf16.vlgmr.msra.gmra.mxu0 %v1036_v55 }
 0x31b   : > { %v1001_v62 = vmul.f32 2.0, %v983_v61  ;;  %v1032_v4 = vsub.f32 %v1000_v37, %v1016_v57 }
 0x31d   : > { %v1033_v3 = vsub.f32 %v1001_v62, %v1017_v59  ;;  %v1040_v5 = vpack.c.bf16 %v1032_v4, %v1028_v8 }
 0x31f   : > { %v1041_v1 = vpack.c.bf16 %v1033_v3, %v1029_v63 }
 0x321   : > { %2309 = vmatprep.mubr.bf16.mxu0 %v1041_v1  ;;  %v2323_v1 = vsub.s32 0, %v2322_v47 }
 0x322   : > { %2310 = vmatmul.mubr.bf16.gmra.mxu0 %v1040_v5 }
 0x323   : > { %2557 = vmatprep.mubr.bf16.mxu0 %v4264_v0 }
 0x33c   : > { %v2036_v6 = vpop.f32.mrf.mxu1 }
 0x33e   : > { %v2038_v7 = vpop.f32.mrf.mxu1 }
 0x340   : > { %v2040_v9 = vpop.f32.mrf.mxu1 }
 0x342   : > { %v2042_v25 = vpop.f32.mrf.mxu1 }
 0x344   : > { %v2046_v10 = vpop.f32.mrf.mxu1 }
 0x346   : > { %v2048_v33 = vpop.f32.mrf.mxu1 }
 0x348   : > { %v2050_v2 = vpop.f32.mrf.mxu1 }
 0x34a   : > { %v2052_v14 = vpop.f32.mrf.mxu1 }
 0x34c   : > { %v2089_v11 = vpop.f32.mrf.mxu0 }
 0x34d   : > { %v2090_v34 = vadd.f32 %v2089_v11, %v2036_v6 }
 0x34e   : > { %v2091_v12 = vpop.f32.mrf.mxu0 }
 0x34f   : > { %v2092_v55 = vadd.f32 %v2091_v12, %v2038_v7  ;;  %v2327_v7 = vsub.s32 1, %v2322_v47 }
 0x350   : > { %v2093_v13 = vpop.f32.mrf.mxu0 }
 0x351   : > { %v2094_v58 = vadd.f32 %v2093_v13, %v2040_v9 }
 0x352   : > { %v2095_v15 = vpop.f32.mrf.mxu0 }
 0x353   : > { %v2096_v51 = vadd.f32 %v2095_v15, %v2042_v25 }
 0x354   : > { %v2099_v20 = vpop.f32.mrf.mxu0 }
 0x355   : > { %v2100_v53 = vadd.f32 %v2099_v20, %v2046_v10 }
 0x356   : > { %v2101_v19 = vpop.f32.mrf.mxu0 }
 0x357   : > { %v2102_v56 = vadd.f32 %v2101_v19, %v2048_v33 }
 0x358   : > { %v2103_v22 = vpop.f32.mrf.mxu0 }
 0x359   : > { %v2104_v44 = vadd.f32 %v2103_v22, %v2050_v2 }
 0x35a   : > { %v2105_v24 = vpop.f32.mrf.mxu0 }
 0x35b   : > { %v2106_v4 = vadd.f32 %v2105_v24, %v2052_v14  ;;  %v757_v14 = vld [vmem:[%s4755_s5] sm:$0x3] }
 0x37d   : > { %v2142_v18 = vpop.f32.mrf.mxu1 }
 0x37e   : > { %v2143_v33 = vadd.f32 %v2142_v18, %v2090_v34 }
 0x37f   : > { %v2144_v28 = vpop.f32.mrf.mxu1 }
 0x380   : > { %v2145_v60 = vadd.f32 %v2144_v28, %v2092_v55 }
 0x381   : > { %v2146_v21 = vpop.f32.mrf.mxu1 }
 0x382   : > { %v2147_v63 = vadd.f32 %v2146_v21, %v2094_v58 }
 0x383   : > { %v2148_v23 = vpop.f32.mrf.mxu1 }
 0x384   : > { %v2149_v57 = vadd.f32 %v2148_v23, %v2096_v51 }
 0x385   : > { %v2152_v26 = vpop.f32.mrf.mxu1 }
 0x386   : > { %v2153_v37 = vadd.f32 %v2152_v26, %v2100_v53 }
 0x387   : > { %v2154_v29 = vpop.f32.mrf.mxu1 }
 0x388   : > { %v2155_v61 = vadd.f32 %v2154_v29, %v2102_v56 }
 0x389   : > { %v2156_v35 = vpop.f32.mrf.mxu1 }
 0x38a   : > { %v2157_v12 = vadd.f32 %v2156_v35, %v2104_v44 }
 0x38b   : > { %v2158_v38 = vpop.f32.mrf.mxu1 }
 0x38c   : > { %v2195_v27 = vpop.f32.mrf.mxu0  ;;  %v2159_v13 = vadd.f32 %v2158_v38, %v2106_v4  ;;  %v2324_v38 = vrot.slane %v757_v14, %v2323_v1 }
 0x38d   : > { %v2196_v19 = vadd.f32 %v2195_v27, %v2143_v33 }
 0x38e   : > { %v2197_v30 = vpop.f32.mrf.mxu0 }
 0x38f   : > { %v2198_v25 = vadd.f32 %v2197_v30, %v2145_v60  ;;  %v2328_v30 = vrot.slane %v757_v14, %v2327_v7  ;;  %v4005_v14 = vld [vmem:[#allocation10 + $0x58] sm:$0xff]  }
 0x390   : > { %v2199_v36 = vpop.f32.mrf.mxu0 }
 0x391   : > { %v2200_v6 = vadd.f32 %v2199_v36, %v2147_v63 }
 0x392   : > { %v2201_v39 = vpop.f32.mrf.mxu0 }
 0x393   : > { %v2202_v62 = vadd.f32 %v2201_v39, %v2149_v57 }
 0x394   : > { %v2205_v41 = vpop.f32.mrf.mxu0 }
 0x395   : > { %v2206_v3 = vadd.f32 %v2205_v41, %v2153_v37 }
 0x396   : > { %v2207_v49 = vpop.f32.mrf.mxu0 }
 0x397   : > { %v2208_v10 = vadd.f32 %v2207_v49, %v2155_v61 }
 0x398   : > { %v2209_v43 = vpop.f32.mrf.mxu0 }
 0x399   : > { %v2210_v21 = vadd.f32 %v2209_v43, %v2157_v12  ;;  %v3998_v12 = vld [vmem:[#allocation10 + $0x38] sm:$0xff]  }
 0x39a   : > { %v2211_v45 = vpop.f32.mrf.mxu0 }
 0x39b   : > { %v2212_v29 = vadd.f32 %v2211_v45, %v2159_v13  ;;  %v4002_v13 = vld [vmem:[#allocation10 + $0x28] sm:$0xff]  }
 0x3ca   : > { %v2248_v40 = vpop.f32.mrf.mxu1 }
 0x3cb   : > { %v2249_v36 = vadd.f32 %v2248_v40, %v2196_v19  ;;  %v4007_v19 = vld [vmem:[#allocation10 + $0x50] sm:$0xff]  }
 0x3cc   : > { %v2250_v42 = vpop.f32.mrf.mxu1 }
 0x3cd   : > { %v2251_v2 = vadd.f32 %v2250_v42, %v2198_v25 }
 0x3ce   : > { %v2252_v16 = vpop.f32.mrf.mxu1 }
 0x3cf   : > { %v2253_v22 = vadd.f32 %v2252_v16, %v2200_v6  ;;  %v3999_v6 = vld [vmem:[#allocation10 + $0x70] sm:$0xff]  }
 0x3d0   : > { %v2254_v17 = vpop.f32.mrf.mxu1 }
 0x3d1   : > { %v2255_v15 = vadd.f32 %v2254_v17, %v2202_v62  ;;  %v758_v17 = vld [vmem:[%s4756_s6] sm:$0x3] }
 0x3d2   : > { %v2258_v46 = vpop.f32.mrf.mxu1  ;;  %v2347_v53 = vrot.slane %v758_v17, %v2327_v7  ;;  %v2343_v47 = vrot.slane %v758_v17, %v2323_v1  ;;  %v3997_v7 = vld [vmem:[#allocation10 + $0x78] sm:$0xff]  }
 0x3d3   : > { %v2259_v9 = vadd.f32 %v2258_v46, %v2206_v3 }
 0x3d4   : > { %v2260_v52 = vpop.f32.mrf.mxu1 }
 0x3d5   : > { %v2261_v20 = vadd.f32 %v2260_v52, %v2208_v10 }
 0x3d6   : > { %v2262_v8 = vpop.f32.mrf.mxu1 }
 0x3d7   : > { %v2263_v39 = vadd.f32 %v2262_v8, %v2210_v21  ;;  %v4008_v21 = vld [vmem:[#allocation10 + $0x10] sm:$0xff]  }
 0x3d8   : > { %v2264_v23 = vpop.f32.mrf.mxu1 }
 0x3d9   : > { %v2265_v49 = vadd.f32 %v2264_v23, %v2212_v29  ;;  %v4010_v23 = vld [vmem:[#allocation10 + $0x8] sm:$0xff]   ;;  %v4029_v29 = vld [vmem:[#allocation10 + $0x178] sm:$0xff]  }
 0x3da   : > { %v2301_v50 = vpop.f32.mrf.mxu0 }
 0x3db   : > { %v2302_v16 = vadd.f32 %v2301_v50, %v2249_v36  ;;  %v4033_v36 = vld [vmem:[#allocation10 + $0x168] sm:$0xff]  }
 0x3dc   : > { %v2303_v54 = vpop.f32.mrf.mxu0 }
 0x3dd   : > { %v2304_v18 = vadd.f32 %v2303_v54, %v2251_v2  ;;  %v2331_v34 = vmul.f32 %v2324_v38, %v2302_v16  ;;  %v4003_v2 = vld [vmem:[#allocation10 + $0x60] sm:$0xff]  }
 0x3de   : > { %v2305_v59 = vpop.f32.mrf.mxu0 }
 0x3df   : > { %v2306_v41 = vadd.f32 %v2305_v59, %v2253_v22  ;;  %v2332_v45 = vmul.f32 %v2328_v30, %v2304_v18  ;;  %v2350_v63 = vadd.f32 %v2343_v47, %v2331_v34  ;;  %v4009_v22 = vld [vmem:[#allocation10 + $0x48] sm:$0xff]   ;;  %v4030_v18 = vld [vmem:[#allocation10 + $0x138] sm:$0xff]  }
 0x3e0   : > { %v2307_v5 = vpop.f32.mrf.mxu0  ;;  %v4017_v34 = vld [vmem:[#allocation10 + $0xe8] sm:$0xff]  }
 0x3e1   : > { %v2308_v28 = vadd.f32 %v2307_v5, %v2255_v15  ;;  %v2333_v40 = vmul.f32 %v2324_v38, %v2306_v41  ;;  %v2351_v59 = vadd.f32 %v2347_v53, %v2332_v45  ;;  %v2358_v15 = vmax.f32 %v2350_v63, 0.0  ;;  %v4036_v41 = vld [vmem:[#allocation10 + $0x120] sm:$0xff]   ;;  %v4040_v63 = vld [vmem:[#allocation10 + $0x110] sm:$0xff]  }
 0x3e2   : > { %v2311_v11 = vpop.f32.mrf.mxu0 }
 0x3e3   : > { %v2312_v24 = vadd.f32 %v2311_v11, %v2259_v9  ;;  %v2334_v27 = vmul.f32 %v2328_v30, %v2308_v28  ;;  %v2352_v60 = vadd.f32 %v2343_v47, %v2333_v40  ;;  %v2359_v8 = vmax.f32 %v2351_v59, 0.0  ;;  %v4000_v9 = vld [vmem:[#allocation10 + $0x30] sm:$0xff]   ;;  %v4001_v11 = vld [vmem:[#allocation10 + $0x68] sm:$0xff]   ;;  %v4006_v28 = vld [vmem:[#allocation10 + $0x18] sm:$0xff]  }
 0x3e4   : > { %v2313_v26 = vpop.f32.mrf.mxu0  ;;  %v4013_v40 = vld [vmem:[#allocation10 + $0xf8] sm:$0xff]   ;;  %v4020_v59 = vld [vmem:[#allocation10 + $0xa0] sm:$0xff]  }
 0x3e5   : > { %v2314_v35 = vadd.f32 %v2313_v26, %v2261_v20  ;;  %v2335_v46 = vmul.f32 %v2324_v38, %v2312_v24  ;;  %v2353_v55 = vadd.f32 %v2347_v53, %v2334_v27  ;;  %v2360_v1 = vmax.f32 %v2352_v60, 0.0  ;;  %v4004_v20 = vld [vmem:[#allocation10 + $0x20] sm:$0xff]   ;;  %v4023_v60 = vld [vmem:[#allocation10 + $0xd0] sm:$0xff]  }
 0x3e6   : > { %v2315_v42 = vpop.f32.mrf.mxu0  ;;  %v4011_v24 = vld [vmem:[#allocation10 + $0x40] sm:$0xff]  }
 0x3e7   : > { %v2336_v43 = vmul.f32 %v2328_v30, %v2314_v35  ;;  %v2316_v48 = vadd.f32 %v2315_v42, %v2263_v39  ;;  %v2354_v58 = vadd.f32 %v2343_v47, %v2335_v46  ;;  %v2361_v50 = vmax.f32 %v2353_v55, 0.0  ;;  %v4012_v26 = vld [vmem:[#allocation10] sm:$0xff]   ;;  %v4032_v35 = vld [vmem:[#allocation10 + $0x130] sm:$0xff]   ;;  %v4034_v39 = vld [vmem:[#allocation10 + $0x128] sm:$0xff]  }
 0x3e8   : > { %v2317_v51 = vpop.f32.mrf.mxu0  ;;  %v4668_v33 = vpack.c.bf16 %v2360_v1, %v2358_v15  ;;  %v4037_v42 = vld [vmem:[#allocation10 + $0x158] sm:$0xff]   ;;  %v4043_v1 = vld [vmem:[#allocation10 + $0x140] sm:$0xff]  }
 0x3e9   : > { %v2318_v52 = vadd.f32 %v2317_v51, %v2265_v49  ;;  %v2337_v54 = vmul.f32 %v2324_v38, %v2316_v48  ;;  %v2355_v56 = vadd.f32 %v2347_v53, %v2336_v43  ;;  %v2362_v3 = vmax.f32 %v2354_v58, 0.0  ;;  %v4035_v38 = vld [vmem:[#allocation10 + $0x160] sm:$0xff]   ;;  %v4038_v49 = vld [vmem:[#allocation10 + $0x118] sm:$0xff]   ;;  %v4018_v58 = vld [vmem:[#allocation10 + $0xa8] sm:$0xff]  }
 0x3ea   : > { %v4663_v10 = vpack.c.bf16 %v2361_v50, %v2359_v8  ;;  %v4014_v55 = vld [vmem:[#allocation10 + $0xb8] sm:$0xff]   ;;  %v4026_v50 = vld [vmem:[#allocation10 + $0x88] sm:$0xff]   ;;  %v4044_v15 = vld [vmem:[#allocation10 + $0x100] sm:$0xff]  }
 0x3eb   : > { %v2338_v57 = vmul.f32 %v2328_v30, %v2318_v52  ;;  %v2356_v37 = vadd.f32 %v2343_v47, %v2337_v54  ;;  %v2363_v62 = vmax.f32 %v2355_v56, 0.0  ;;  %v4031_v30 = vld [vmem:[#allocation10 + $0x170] sm:$0xff]   ;;  %v4042_v8 = vld [vmem:[#allocation10 + $0x108] sm:$0xff]  }
 0x3ec   : > { %v4015_v56 = vld [vmem:[#allocation10 + $0xf0] sm:$0xff]  }
 0x3ed   : > { %v2357_v44 = vadd.f32 %v2347_v53, %v2338_v57  ;;  %v2364_v61 = vmax.f32 %v2356_v37, 0.0  ;;  %v4016_v57 = vld [vmem:[#allocation10 + $0xb0] sm:$0xff]   ;;  %v4019_v37 = vld [vmem:[#allocation10 + $0xe0] sm:$0xff]  }
 0x3ef   : > { %v2365_v4 = vmax.f32 %v2357_v44, 0.0  ;;  %v4661_v25 = vpack.c.bf16 %v2364_v61, %v2362_v3  ;;  %v4021_v44 = vld [vmem:[#allocation10 + $0xd8] sm:$0xff]   ;;  %v4025_v61 = vld [vmem:[#allocation10 + $0xc8] sm:$0xff]  }
 0x3f0   : > { %v4041_v3 = vld [vmem:[#allocation10 + $0x148] sm:$0xff]  }
 0x3f1   : > { %v4659_v5 = vpack.c.bf16 %v2365_v4, %v2363_v62  ;;  %v4027_v62 = vld [vmem:[#allocation10 + $0xc0] sm:$0xff]  }
 0x3f2   : > { %v4028_v4 = vld [vmem:[#allocation10 + $0x80] sm:$0xff]  }
 0x3f3   : > { %2480 = vmatprep.subr.bf16.mxu1 %v4659_v5 }
 0x3f4   : > { %2481 = vmatpush1.bf16.msra.mxu1 %v4661_v25 }
 0x3f5   : > { %2482 = vmatprep.subr.bf16.mxu1 %v4663_v10 }
 0x3f8   : > { %2483 = vmatpush1.bf16.msra.mxu1 %v4668_v33 }
 0x3f9   : > { %3528 = vmatprep.subr.bf16.mxu1 %v3997_v7 }
 0x3fb   : > { %3447 = vmatmul.mubr.msk.bf16.vlgmr.msra.gmra.mxu1 %vm759_vm2, %v4555_v31 }
 0x3fc   : > { %3529 = vmatpush3.bf16.msra.mxu1 %v3998_v12  ;;  %2510 = vmatprep.mubr.bf16.mxu1 %v4264_v0 }
 0x3fd   : > { %3530 = vmatprep.subr.bf16.mxu1 %v3999_v6 }
 0x400   : > { %3531 = vmatpush3.bf16.msra.mxu1 %v4000_v9 }
 0x401   : > { %3532 = vmatprep.subr.bf16.mxu1 %v4001_v11 }
 0x403   : > { %3448 = vmatmul.mubr.msk.bf16.gmra.mxu1 %vm759_vm2, %v4557_v32 }
 0x404   : > { %3533 = vmatpush3.bf16.msra.mxu1 %v4002_v13  ;;  %2926 = vmatprep.mubr.bf16.mxu1 %v4663_v10 }
 0x405   : > { %3534 = vmatprep.subr.bf16.mxu1 %v4003_v2  ;;  %v2588_v2 = vunpack.c.h.bf16 %v4668_v33 }
 0x408   : > { %3535 = vmatpush3.bf16.msra.mxu1 %v4004_v20 }
 0x409   : > { %3536 = vmatprep.subr.bf16.mxu1 %v4005_v14  ;;  %v2587_v14 = vunpack.c.l.bf16 %v4663_v10 }
 0x40c   : > { %3537 = vmatpush3.bf16.msra.mxu1 %v4006_v28 }
 0x40d   : > { %3538 = vmatprep.subr.bf16.mxu1 %v4007_v19  ;;  %v2589_v19 = vunpack.c.h.bf16 %v4663_v10  ;;  %v2591_v10 = vunpack.c.l.bf16 %v4659_v5 }
 0x410   : > { %3539 = vmatpush3.bf16.msra.mxu1 %v4008_v21  ;;  %v2586_v21 = vunpack.c.l.bf16 %v4668_v33 }
 0x411   : > { %3540 = vmatprep.subr.bf16.mxu1 %v4009_v22 }
 0x414   : > { %3541 = vmatpush3.bf16.msra.mxu1 %v4010_v23 }
 0x415   : > { %3542 = vmatprep.subr.bf16.mxu1 %v4011_v24 }
 0x418   : > { %3543 = vmatpush3.bf16.msra.mxu1 %v4012_v26 }
 0x419   : > { %3584 = vmatprep.subr.bf16.mxu1 %v4029_v29 }
 0x41b   : > { %2927 = vmatmul.mubr.bf16.vlgmr.msra.gmra.mxu1 %v4668_v33 }
 0x41c   : > { %2934 = vmatprep.mubr.bf16.mxu1 %v4659_v5  ;;  %3585 = vmatpush3.bf16.msra.mxu1 %v4030_v18 }
 0x41d   : > { %3586 = vmatprep.subr.bf16.mxu1 %v4031_v30 }
 0x420   : > { %3587 = vmatpush3.bf16.msra.mxu1 %v4032_v35 }
 0x421   : > { %3588 = vmatprep.subr.bf16.mxu1 %v4033_v36 }
 0x423   : > { %2935 = vmatmul.mubr.bf16.gmra.mxu1 %v4661_v25 }
 0x424   : > { %3589 = vmatpush3.bf16.msra.mxu1 %v4034_v39 }
 0x425   : > { %3590 = vmatprep.subr.bf16.mxu1 %v4035_v38 }
 0x428   : > { %3591 = vmatpush3.bf16.msra.mxu1 %v4036_v41 }
 0x429   : > { %3592 = vmatprep.subr.bf16.mxu1 %v4037_v42  ;;  %v2592_v42 = vunpack.c.h.bf16 %v4661_v25 }
 0x42c   : > { %3593 = vmatpush3.bf16.msra.mxu1 %v4038_v49 }
 0x4bb   : > { %v2502_v17 = vpop.f32.mrf.mxu1 }
 0x4bd   : > { %v2504_v27 = vpop.f32.mrf.mxu1 }
 0x4bf   : > { %v2506_v43 = vpop.f32.mrf.mxu1 }
 0x4c0   : > { %v2521_v54 = vpack.c.bf16 %v2506_v43, %v2502_v17  ;;  %v2593_v17 = vunpack.c.h.bf16 %v4659_v5 }
 0x4c1   : > { %v2508_v16 = vpop.f32.mrf.mxu1 }
 0x4c2   : > { %v2522_v47 = vpack.c.bf16 %v2508_v16, %v2504_v27  ;;  %v2590_v27 = vunpack.c.l.bf16 %v4661_v25 }
 0x4c3   : > { %v2512_v46 = vpop.f32.mrf.mxu1 }
 0x4c5   : > { %v2514_v48 = vpop.f32.mrf.mxu1 }
 0x4c7   : > { %v2516_v51 = vpop.f32.mrf.mxu1 }
 0x4c8   : > { %v2523_v52 = vpack.c.bf16 %v2516_v51, %v2512_v46 }
 0x4c9   : > { %v2518_v45 = vpop.f32.mrf.mxu1 }
 0x4ca   : > { %v2524_v53 = vpack.c.bf16 %v2518_v45, %v2514_v48 }
 0x4cc   : > { %2537 = vmatprep.subr.bf16.mxu0 %v2524_v53 }
 0x4cd   : > { %2538 = vmatpush1.bf16.msra.mxu0 %v2523_v52 }
 0x4ce   : > { %2539 = vmatprep.subr.bf16.mxu0 %v2522_v47 }
 0x4d1   : > { %2540 = vmatpush1.bf16.msra.mxu0 %v2521_v54 }
 0x4d2   : > { %3556 = vmatprep.subr.bf16.mxu0 %v4013_v40 }
 0x4d4   : > { %3449 = vmatmul.mubr.msk.bf16.vlgmr.msra.gmra.mxu0 %vm759_vm2, %v4555_v31  ;;  %v4022_v31 = vld [vmem:[#allocation10 + $0x98] sm:$0xff]  }
 0x4d5   : > { %3557 = vmatpush3.bf16.msra.mxu0 %v4014_v55  ;;  %2567 = vmatprep.mubr.bf16.mxu0 %v4264_v0  ;;  %v4024_v0 = vld [vmem:[#allocation10 + $0x90] sm:$0xff]  }
 0x4d6   : > { %3558 = vmatprep.subr.bf16.mxu0 %v4015_v56 }
 0x4d9   : > { %3559 = vmatpush3.bf16.msra.mxu0 %v4016_v57 }
 0x4da   : > { %3560 = vmatprep.subr.bf16.mxu0 %v4017_v34 }
 0x4dc   : > { %3450 = vmatmul.mubr.msk.bf16.gmra.mxu0 %vm759_vm2, %v4557_v32  ;;  %v4039_v32 = vld [vmem:[#allocation10 + $0x150] sm:$0xff]  }
 0x4dd   : > { %3561 = vmatpush3.bf16.msra.mxu0 %v4018_v58  ;;  %2975 = vmatprep.mubr.bf16.mxu0 %v2522_v47 }
 0x4de   : > { %3562 = vmatprep.subr.bf16.mxu0 %v4019_v37  ;;  %3594 = vmatprep.subr.bf16.mxu1 %v4039_v32  ;;  %v3499_v32 = vld [vmem:[%s4758_s8] ss:$0 sm:$0xff] }
 0x4df   : > { %3595 = vmatpush3.bf16.msra.mxu1 %v4040_v63 }
 0x4e0   : > { %3596 = vmatprep.subr.bf16.mxu1 %v4041_v3 }
 0x4e1   : > { %3563 = vmatpush3.bf16.msra.mxu0 %v4020_v59 }
 0x4e2   : > { %3564 = vmatprep.subr.bf16.mxu0 %v4021_v44 }
 0x4e3   : > { %3597 = vmatpush3.bf16.msra.mxu1 %v4042_v8 }
 0x4e4   : > { %3598 = vmatprep.subr.bf16.mxu1 %v4043_v1 }
 0x4e5   : > { %3565 = vmatpush3.bf16.msra.mxu0 %v4022_v31 }
 0x4e6   : > { %3566 = vmatprep.subr.bf16.mxu0 %v4023_v60 }
 0x4e7   : > { %3599 = vmatpush3.bf16.msra.mxu1 %v4044_v15 }
 0x4e9   : > { %3567 = vmatpush3.bf16.msra.mxu0 %v4024_v0 }
 0x4ea   : > { %3568 = vmatprep.subr.bf16.mxu0 %v4025_v61 }
 0x4ed   : > { %3569 = vmatpush3.bf16.msra.mxu0 %v4026_v50 }
 0x4ee   : > { %3570 = vmatprep.subr.bf16.mxu0 %v4027_v62 }
 0x4f1   : > { %3571 = vmatpush3.bf16.msra.mxu0 %v4028_v4 }
 0x4f4   : > { %2976 = vmatmul.mubr.bf16.vlgmr.msra.gmra.mxu0 %v2521_v54 }
 0x4f5   : > { %2983 = vmatprep.mubr.bf16.mxu0 %v2524_v53  ;;  %v3544_v53 = vpop.f32.mrf.mxu1 }
 0x4fc   : > { %2984 = vmatmul.mubr.bf16.gmra.mxu0 %v2523_v52  ;;  %v3545_v52 = vpop.f32.mrf.mxu1 }
 0x4fd   : > { %v3546_v60 = vadd.f32 %v3545_v52, %v3544_v53 }
 0x4fe   : > { %v3547_v47 = vpop.f32.mrf.mxu1 }
 0x500   : > { %v3548_v54 = vpop.f32.mrf.mxu1 }
 0x501   : > { %v3549_v3 = vadd.f32 %v3548_v54, %v3547_v47 }
 0x502   : > { %v3550_v56 = vpop.f32.mrf.mxu1 }
 0x504   : > { %v3551_v34 = vpop.f32.mrf.mxu1 }
 0x506   : > { %v3553_v58 = vpop.f32.mrf.mxu1 }
 0x508   : > { %v3554_v37 = vpop.f32.mrf.mxu1 }
 0x594   : > { %v2559_v7 = vpop.f32.mrf.mxu0 }
 0x595   : > { %v2578_v13 = vmul.f32 2.0, %v2559_v7 }
 0x596   : > { %v2561_v12 = vpop.f32.mrf.mxu0 }
 0x597   : > { %v2579_v9 = vmul.f32 2.0, %v2561_v12  ;;  %v2594_v29 = vsub.f32 %v2578_v13, %v2586_v21 }
 0x598   : > { %v2563_v6 = vpop.f32.mrf.mxu0 }
 0x599   : > { %v2580_v11 = vmul.f32 2.0, %v2563_v6  ;;  %v2595_v24 = vsub.f32 %v2579_v9, %v2587_v14 }
 0x59a   : > { %v2565_v20 = vpop.f32.mrf.mxu0 }
 0x59b   : > { %v2581_v28 = vmul.f32 2.0, %v2565_v20  ;;  %v2596_v22 = vsub.f32 %v2580_v11, %v2588_v2  ;;  %v3500_v11 = vld [vmem:[%s4798_s11] ss:$0 sm:$0xff]  ;;  %v3552_v2 = vadd.f32 %v3551_v34, %v3550_v56 }
 0x59c   : > { %v2569_v23 = vpop.f32.mrf.mxu0 }
 0x59d   : > { %v2597_v26 = vsub.f32 %v2581_v28, %v2589_v19  ;;  %v2602_v35 = vpack.c.bf16 %v2596_v22, %v2594_v29  ;;  %v2582_v41 = vmul.f32 2.0, %v2569_v23 }
 0x59e   : > { %v2571_v18 = vpop.f32.mrf.mxu0 }
 0x59f   : > { %v2603_v30 = vpack.c.bf16 %v2597_v26, %v2595_v24  ;;  %v2583_v39 = vmul.f32 2.0, %v2571_v18  ;;  %v2598_v48 = vsub.f32 %v2582_v41, %v2590_v27  ;;  %v3555_v24 = vadd.f32 %v3554_v37, %v3553_v58 }
 0x5a0   : > { %v2573_v36 = vpop.f32.mrf.mxu0 }
 0x5a1   : > { %v2584_v38 = vmul.f32 2.0, %v2573_v36  ;;  %3024 = vmatprep.mubr.bf16.mxu1 %v2603_v30  ;;  %v2599_v16 = vsub.f32 %v2583_v39, %v2591_v10 }
 0x5a2   : > { %v2575_v49 = vpop.f32.mrf.mxu0  ;;  %3025 = vmatmul.mubr.bf16.vlgmr.msra.gmra.mxu1 %v2602_v35 }
 0x5a3   : > { %v2585_v33 = vmul.f32 2.0, %v2575_v49  ;;  %v2600_v43 = vsub.f32 %v2584_v38, %v2592_v42 }
 0x5a5   : > { %v2601_v46 = vsub.f32 %v2585_v33, %v2593_v17  ;;  %v2604_v45 = vpack.c.bf16 %v2600_v43, %v2598_v48 }
 0x5a7   : > { %v2605_v51 = vpack.c.bf16 %v2601_v46, %v2599_v16 }
 0x5a9   : > { %3032 = vmatprep.mubr.bf16.mxu1 %v2605_v51 }
 0x5aa   : > { %3033 = vmatmul.mubr.bf16.gmra.mxu1 %v2604_v45 }
 0x5b4   : > { %v3572_v40 = vpop.f32.mrf.mxu0 }
 0x5b6   : > { %v3573_v55 = vpop.f32.mrf.mxu0 }
 0x5b7   : > { %v3574_v59 = vadd.f32 %v3573_v55, %v3572_v40 }
 0x5b8   : > { %v3575_v57 = vpop.f32.mrf.mxu0 }
 0x5b9   : > { %v2978_v61 = vadd.f32 %v3574_v59, %v3546_v60 }
 0x5ba   : > { %v3576_v5 = vpop.f32.mrf.mxu0 }
 0x5bb   : > { %v3577_v50 = vadd.f32 %v3576_v5, %v3575_v57 }
 0x5bc   : > { %v3578_v25 = vpop.f32.mrf.mxu0 }
 0x5bd   : > { %v2981_v15 = vadd.f32 %v3577_v50, %v3549_v3 }
 0x5be   : > { %v3579_v44 = vpop.f32.mrf.mxu0 }
 0x5bf   : > { %v3580_v7 = vadd.f32 %v3579_v44, %v3578_v25 }
 0x5c0   : > { %v3581_v62 = vpop.f32.mrf.mxu0 }
 0x5c1   : > { %v2986_v19 = vadd.f32 %v3580_v7, %v3552_v2 }
 0x5c2   : > { %v3582_v12 = vpop.f32.mrf.mxu0 }
 0x5c3   : > { %v3583_v14 = vadd.f32 %v3582_v12, %v3581_v62 }
 0x5c5   : > { %v2989_v30 = vadd.f32 %v3583_v14, %v3555_v24 }
 0x662   : > { %v3600_v31 = vpop.f32.mrf.mxu1 }
 0x664   : > { %v3601_v0 = vpop.f32.mrf.mxu1 }
 0x665   : > { %v3602_v4 = vadd.f32 %v3601_v0, %v3600_v31 }
 0x666   : > { %v3603_v63 = vpop.f32.mrf.mxu1 }
 0x667   : > { %v3027_v8 = vadd.f32 %v3602_v4, %v2978_v61 }
 0x668   : > { %v3604_v1 = vpop.f32.mrf.mxu1 }
 0x669   : > { %v3047_v6 = vmul.f32 %v3499_v32, %v3027_v8  ;;  %v3605_v9 = vadd.f32 %v3604_v1, %v3603_v63 }
 0x66a   : > { %v3606_v13 = vpop.f32.mrf.mxu1 }
 0x66b   : > { %v3030_v20 = vadd.f32 %v3605_v9, %v2981_v15  ;;  %v3057_v21 = vadd.f32 %v3500_v11, %v3047_v6 }
 0x66c   : > { %v3607_v28 = vpop.f32.mrf.mxu1 }
 0x66d   : > { %v3048_v22 = vmul.f32 %v3499_v32, %v3030_v20  ;;  %v3608_v23 = vadd.f32 %v3607_v28, %v3606_v13  ;;  %v3061_v36 = vmax.f32 %v3057_v21, 0.0 }
 0x66e   : > { %v3609_v26 = vpop.f32.mrf.mxu1 }
 0x66f   : > { %v3058_v29 = vadd.f32 %v3500_v11, %v3048_v22  ;;  %v3035_v18 = vadd.f32 %v3608_v23, %v2986_v19 }
 0x670   : > { %v3610_v35 = vpop.f32.mrf.mxu1 }
 0x671   : > { %v3062_v39 = vmax.f32 %v3058_v29, 0.0  ;;  %v3049_v38 = vmul.f32 %v3499_v32, %v3035_v18  ;;  %v3611_v41 = vadd.f32 %v3610_v35, %v3609_v26 }
 0x673   : > { %v3520_v42 = vpack.c.bf16 %v3062_v39, %v3061_v36  ;;  %v3038_v49 = vadd.f32 %v3611_v41, %v2989_v30  ;;  %v3059_v10 = vadd.f32 %v3500_v11, %v3049_v38 }
 0x675   : > { %3521 = vst [vmem:[%s456_s29] sm:$0xff] %v3520_v42   ;;  %v3050_v33 = vmul.f32 %v3499_v32, %v3038_v49  ;;  %v3063_v27 = vmax.f32 %v3059_v10, 0.0 }
 0x677   : > { %v3060_v17 = vadd.f32 %v3500_v11, %v3050_v33 }
 0x679   : > { %v3064_v43 = vmax.f32 %v3060_v17, 0.0 }
 0x67b   : > { %v3525_v16 = vpack.c.bf16 %v3064_v43, %v3063_v27 }
 0x67d   : > { %3527 = vst [vmem:[%s456_s29 + $0x8] sm:$0xff] %v3525_v16  }
 0x67e   : > { %4192 = shalt.err (!%p4189_p0)
}
 0x67f   : > { %s4193_s28 = scalar_lea.hbm %s4705_s26, 256  ;;  %s4197_s23 = scalar_lea.hbm %s4799_s24, 512 }
 0x680   : > { %p4194_p9 = scmp.ne.s32.totalorder %s4705_s26, %s4193_s28  ;;  %p4198_p2 = scmp.lt.s32.totalorder %s4705_s26, %s4799_s24 }
 0x681   : > { %p4199_p10 = scmp.lt.s32.totalorder %s4197_s23, %s4193_s28 }
 0x682   : > { %p4195_p5 = pnand %p4194_p9, %p4800_p1 }
 0x683   : > { %p4200_p13 = por %p4199_p10, %p4198_p2 }
 0x684   : > { %p4196_p11 = pneg %p4195_p5 }
 0x686   : > { %p4201_p3 = pnand %p4200_p13, %p4196_p11 }
 0x688   : > { %4204 = shalt.err (!%p4201_p3)
}
 0x689   : > { %s4266_s29 = smov 64   ;;  %s4267_s21 = smov 4  }
 0x68a   : > { %3632 = dma.vmem_to_hbm [thread:$0]  (%p4800_p1), %s4707_s13, 256, %s4705_s26, %s3086_s20, %s4266_s29, %s4266_s29, %s4267_s21  }
 0x68b PF: > { %s4801_s19 = sld [smem:[#allocation16_spill]]  ;;  %p4804_p6 = scmp.ge.s32.totalorder %s4251_s16, 2 }
 0x68c   : > { %s4802_s9 = sld [smem:[#allocation17_spill]] }
 0x691   : > { %s3114_s10 = sand.u32 1, %s4801_s19  }
 0x692   : > { %p4803_p4 = scmp.ne.s32.totalorder %s4802_s9, 0  ;;  %s3115_s17 = scalar_lea.sflag [#allocation4], %s3114_s10 }
 0x694   : > { %p3652_p8 = pnand %p4804_p6, %p4803_p4 }
 0x696   : > { %p3653_p12 = pneg %p3652_p8 }
 0x698   : > { %4234 = dma.done.wait (%p3653_p12), %s3115_s17, 256  }
 0x699   : > { %4236 = vsyncadd (%p3653_p12), %s3115_s17, 4294967040  ;;  %s4805_s16 = sld [smem:[#allocation18_spill]]  ;;  %s4806_s13 = smov %s4243_s14 }
 0x69a   : > { %s4807_s14 = smov %s4247_s15  ;;  %s4808_s15 = smov %s4400_s18 }
 0x69f   : > { %p25_p7 = scmp.ge.s32.totalorder %s4805_s16, 4  }
 0x6a1   :  { %27 = sbr.rel (!%p25_p7) target bundleno = 12 (0xc), region = 129 }
 0x6a6   :  { %3120 = vsyncpa [#allocation3], 1 }
 0x6a7   :  { %3122 = vsyncpa [#allocation3 + $0x1], 1 }
 0x6a8   :  { %3123 = vsyncpa [#allocation6], 1 }
 0x6a9   :  { %3125 = vsyncpa [#allocation6 + $0x1], 1 }
 0x6aa   :  { %3126 = vsyncpa [#allocation9], 1 }
 0x6ab   :  { %3127 = vsyncpa [#allocation4], 1 }
 0x6ac   :  { %3129 = vsyncpa [#allocation4 + $0x1], 1 }

</bundles_post_ra>
